<compile_context>
chip_gen: v7x
topology: tpu7x:2x2x1
jax: 0.10.0
libtpu: 0.0.40
codegen_flags: <defaults>
</compile_context>

<pallas_src>
import jax
import jax.numpy as jnp
import numpy as np
from jax.experimental import pallas as pl
from jax.experimental.pallas import tpu as pltpu


def _round_up(x, m):
    return (x + m - 1) // m * m


def _pick_tile(n, candidates):
    for c in candidates:
        if n % c == 0:
            return c
    return n


def _vmem_cap_bytes():
    try:
        return int(pltpu.get_tpu_info().vmem_capacity_bytes)
    except Exception:
        return 128 << 20          # v5e/v6e-sized fallback


def _vmem_limit(nbytes):
    # ~2x actual footprint + headroom, clamped generation-aware:
    # <=48 MiB on 128 MiB parts (v5e/v6e), <=~40 MiB on v7x (64 MiB VMEM).
    cap = _vmem_cap_bytes()
    ceiling = max(16 << 20, min(48 << 20, cap - (24 << 20)))
    return int(min(max(2 * nbytes + (4 << 20), 16 << 20), ceiling))


def _pick_time_chunk(T, Bp, Hp):
    """Largest chunk C dividing T whose double-buffered per-chunk blocks fit VMEM."""
    budget = 20 << 20
    cands = ((T,) if T <= 64 else ()) + (64, 32, 16, 8, 4, 2, 1)
    for c in cands:
        if c >= 1 and T % c == 0:
            blk = 2 * Bp * c * 4 * Hp * 4 + 2 * Bp * c * Hp * 2
            if blk <= budget:
                return c
    return 1


# --------------------------------------------------------------------------- #
# Kernel A / C: batched matmul + bias (fully parallel, MXU-shaped)
# --------------------------------------------------------------------------- #
def _matmul_bias_kernel(x_ref, w_ref, b_ref, o_ref):
    """(tm, K) @ (K, tn) + (1, tn), f32 MXU accumulation."""
    o_ref[...] = (jnp.dot(x_ref[...], w_ref[...],
                          preferred_element_type=jnp.float32)
                  + b_ref[...]).astype(o_ref.dtype)


def _projection(x, w_t, b, out_dtype):
    """(M, K) @ (K, N) + b with the N axis as the OUTER grid dim.

    With N outer / M inner, each (K, tn) weight block is DMA'd from HBM exactly once
    (block index constant across the inner axis) while the small activation blocks
    re-stream — minimal weight traffic for captioning-scale N >> M.
    """
    M, K = x.shape
    N = w_t.shape[1]
    tm = _pick_tile(M, (512, 256, 128, 64, 32, 16, 8))
    tn = _pick_tile(N, (2048, 1024, 512, 256, 128))
    out_bytes = np.dtype(out_dtype).itemsize
    vmem = (2 * tm * K * x.dtype.itemsize + 2 * K * tn * w_t.dtype.itemsize
            + 2 * tn * b.dtype.itemsize + 2 * tm * tn * out_bytes)
    return pl.pallas_call(
        _matmul_bias_kernel,
        out_shape=jax.ShapeDtypeStruct((M, N), out_dtype),
        grid=(N // tn, M // tm),                    # N outer, M inner
        in_specs=[
            pl.BlockSpec((tm, K), lambda j, i: (i, 0)),
            pl.BlockSpec((K, tn), lambda j, i: (0, j)),   # constant over inner axis
            pl.BlockSpec((1, tn), lambda j, i: (0, j)),
        ],
        out_specs=pl.BlockSpec((tm, tn), lambda j, i: (i, j)),
        compiler_params=pltpu.CompilerParams(
            dimension_semantics=("parallel", "parallel"),
            vmem_limit_bytes=_vmem_limit(vmem),
        ),
    )(x, w_t, b)


# --------------------------------------------------------------------------- #
# Kernel B: time-chunked LSTM recurrence
# --------------------------------------------------------------------------- #
def _lstm_kernel(pre_ref, whh_ref, h_out_ref, h_ref, c_ref):
    """One grid step = C LSTM timesteps (recurrence carried in VMEM scratch).

    pre_ref  : (Bp, C*4*Hp) f32   precomputed x_t @ W_ih^T + b, gate order i,f,g,o
    whh_ref  : (Hp, 4*Hp)   bf16  recurrent weight, whole-array resident in VMEM
    h_out_ref: (Bp, C*Hp)   bf16  hidden states for the C timesteps of this chunk
    h_ref    : (Bp, Hp)     bf16  scratch: h_{t-1} carry
    c_ref    : (Bp, Hp)     f32   scratch: c_{t-1} carry
    """
    hp = c_ref.shape[-1]
    n_steps = pre_ref.shape[-1] // (4 * hp)

    @pl.when(pl.program_id(0) == 0)
    def _():
        h_ref[...] = jnp.zeros_like(h_ref)     # h_{-1} = 0
        c_ref[...] = jnp.zeros_like(c_ref)     # c_{-1} = 0

    def step(s, carry):
        g_start = pl.multiple_of(s * (4 * hp), 4 * hp)
        # Only the small recurrent matmul is on the serial path (K = Hp).
        gates = pre_ref[:, pl.ds(g_start, 4 * hp)] + jnp.dot(
            h_ref[...], whh_ref[...], preferred_element_type=jnp.float32)
        # Hp is a multiple of 128 -> lane-aligned gate slices (no XLU shuffles).
        i_g = jax.nn.sigmoid(gates[:, 0 * hp:1 * hp])
        f_g = jax.nn.sigmoid(gates[:, 1 * hp:2 * hp])
        g_g = jnp.tanh(gates[:, 2 * hp:3 * hp])
        o_g = jax.nn.sigmoid(gates[:, 3 * hp:4 * hp])
        c_new = f_g * c_ref[...] + i_g * g_g          # f32 cell math (v5e-safe)
        h_new = o_g * jnp.tanh(c_new)
        c_ref[...] = c_new
        h_bf = h_new.astype(h_out_ref.dtype)
        h_ref[...] = h_bf                             # carry h_t for the next step
        h_out_ref[:, pl.ds(pl.multiple_of(s * hp, hp), hp)] = h_bf
        return carry

    jax.lax.fori_loop(0, n_steps, step, 0, unroll=True)


# --------------------------------------------------------------------------- #
# One-time weight preparation (hoisted out of the forward path)
# --------------------------------------------------------------------------- #
def prepare_decoder_params(params):
    embed_w = params["embed_weight"]          # (vocab, E)
    w_ih = params["w_ih"]                     # (4H, E)  rows: [i; f; g; o]
    w_hh = params["w_hh"]                     # (4H, H)
    w_fc = params["w_fc"]                     # (V, H)
    E = embed_w.shape[1]
    H = w_hh.shape[1]
    V = w_fc.shape[0]
    Ep, Hp, Vp = _round_up(E, 128), _round_up(H, 128), _round_up(V, 128)

    def gate_pad_t(w, in_dim, in_dim_p):      # (4H, in) -> (in_p, 4*Hp) transposed
        w4 = w.reshape(4, H, in_dim)
        w4 = jnp.pad(w4, ((0, 0), (0, Hp - H), (0, in_dim_p - in_dim)))
        return jnp.transpose(w4, (2, 0, 1)).reshape(in_dim_p, 4 * Hp)

    w_ih_t = gate_pad_t(w_ih, E, Ep).astype(jnp.bfloat16)        # (Ep, 4Hp)
    w_hh_t = gate_pad_t(w_hh, H, Hp).astype(jnp.bfloat16)        # (Hp, 4Hp)
    b4 = (params["b_ih"] + params["b_hh"]).reshape(4, H)
    b_gate = jnp.pad(b4, ((0, 0), (0, Hp - H))).reshape(1, 4 * Hp).astype(jnp.float32)
    w_fc_t = jnp.pad(w_fc.T, ((0, Hp - H), (0, Vp - V))).astype(jnp.bfloat16)
    b_fc = jnp.pad(params["b_fc"], (0, Vp - V)).reshape(1, Vp).astype(jnp.float32)
    embed_p = jnp.pad(embed_w, ((0, 0), (0, Ep - E))).astype(jnp.bfloat16)
    return dict(embed=embed_p, w_ih_t=w_ih_t, w_hh_t=w_hh_t, b_gate=b_gate,
                w_fc_t=w_fc_t, b_fc=b_fc)


# --------------------------------------------------------------------------- #
# Forward pass (eval mode; dropout is a no-op)
# --------------------------------------------------------------------------- #
def decoder_rnn_forward(features, captions, prep, out_vocab):
    embed_p = prep["embed"]          # (vocab, Ep) bf16
    w_ih_t = prep["w_ih_t"]          # (Ep, 4Hp)   bf16
    w_hh_t = prep["w_hh_t"]          # (Hp, 4Hp)   bf16
    b_gate = prep["b_gate"]          # (1, 4Hp)    f32
    w_fc_t = prep["w_fc_t"]          # (Hp, Vp)    bf16
    b_fc = prep["b_fc"]              # (1, Vp)     f32

    Ep = w_ih_t.shape[0]
    Hp = w_hh_t.shape[0]
    Vp = w_fc_t.shape[1]
    B, E = features.shape
    T = captions.shape[1]            # number of output timesteps
    Bp = _round_up(B, 16)            # bf16 sublane-friendly batch padding
    M = Bp * T

    # ---- glue (plain JAX, batch-first; padding is inert, sliced away) --------
    # LSTM steps 0..T-1 use inputs [features, embed(captions[:, :T-1])]; the last
    # caption token never reaches fc(hiddens[:, :-1, :]) in the reference.
    emb = embed_p[captions[:, :T - 1]]                           # (B, T-1, Ep)
    feat = jnp.pad(features, ((0, 0), (0, Ep - E))).astype(jnp.bfloat16)
    seq = jnp.concatenate([feat[:, None, :], emb], axis=1)       # (B, T, Ep)
    seq = jnp.pad(seq, ((0, Bp - B), (0, 0), (0, 0)))            # (Bp, T, Ep)
    x_m = seq.reshape(M, Ep)                                     # rows ordered (b, t)

    # ---- kernel A: input-gate projection for ALL timesteps (parallel) --------
    pre = _projection(x_m, w_ih_t, b_gate, jnp.float32)          # (M, 4Hp) f32
    pre2d = pre.reshape(Bp, T * 4 * Hp)                          # free reshape

    # ---- kernel B: time-chunked LSTM recurrence (sequential grid) ------------
    C = _pick_time_chunk(T, Bp, Hp)
    lstm_vmem = (2 * Bp * C * 4 * Hp * 4        # pre-gate chunk (f32, double-buffered)
                 + Hp * 4 * Hp * 2              # resident W_hh^T (single copy)
                 + 2 * Bp * C * Hp * 2          # hidden output chunk
                 + Bp * Hp * 2 + Bp * Hp * 4)   # h / c carries
    hid2d = pl.pallas_call(
        _lstm_kernel,
        out_shape=jax.ShapeDtypeStruct((Bp, T * Hp), jnp.bfloat16),
        grid_spec=pltpu.PrefetchScalarGridSpec(
            num_scalar_prefetch=0,
            grid=(T // C,),
            in_specs=[
                pl.BlockSpec((Bp, C * 4 * Hp), lambda t: (0, t)),
                # whole-array resident recurrent weight: one VMEM copy, no double-buffer
                pl.BlockSpec(memory_space=pltpu.MemorySpace.VMEM),
            ],
            out_specs=pl.BlockSpec((Bp, C * Hp), lambda t: (0, t)),
            scratch_shapes=[
                pltpu.VMEM((Bp, Hp), jnp.bfloat16),   # h carry
                pltpu.VMEM((Bp, Hp), jnp.float32),    # c carry
            ],
        ),
        compiler_params=pltpu.CompilerParams(
            dimension_semantics=("arbitrary",),       # recurrence -> sequential
            vmem_limit_bytes=_vmem_limit(lstm_vmem),
        ),
    )(pre2d, w_hh_t)
    # On v7x with Bp >= 32 a leading "parallel" batch-block grid axis would shard the
    # recurrence across both TensorCores; omitted here since the test Bp == 16.

    # ---- kernel C: FC over all Bp*T rows (vocab-outer grid, weight read once) -
    hid_m = hid2d.reshape(M, Hp)                                 # free reshape
    logits = _projection(hid_m, w_fc_t, b_fc, jnp.float32)       # (M, Vp) f32

    out = logits.reshape(Bp, T, Vp)                              # already batch-first
    return out[:B, :, :out_vocab]


def _reference_forward(features, captions, params):
    """Pure-JAX f32 reference mirroring the PyTorch module exactly."""
    emb = params["embed_weight"][captions]
    seq = jnp.concatenate([features[:, None, :], emb], axis=1)   # (B, T+1, E)
    H = params["w_hh"].shape[1]
    B = features.shape[0]
    wih_t, whh_t = params["w_ih"].T, params["w_hh"].T
    b = params["b_ih"] + params["b_hh"]

    def step(carry, x):
        h, c = carry
        g = x @ wih_t + h @ whh_t + b
        i = jax.nn.sigmoid(g[:, :H])
        f = jax.nn.sigmoid(g[:, H:2 * H])
        gg = jnp.tanh(g[:, 2 * H:3 * H])
        o = jax.nn.sigmoid(g[:, 3 * H:])
        c = f * c + i * gg
        h = o * jnp.tanh(c)
        return (h, c), h

    h0 = jnp.zeros((B, H), jnp.float32)
    _, hs = jax.lax.scan(step, (h0, h0), jnp.transpose(seq, (1, 0, 2)))
    hs = jnp.transpose(hs, (1, 0, 2))                            # (B, T+1, H)
    return hs[:, :-1, :] @ params["w_fc"].T + params["b_fc"]


if __name__ == "__main__":
    # Small synthetic config consistent with the module's __init__.
    embed_size, hidden_size, vocab_size = 32, 32, 64
    batch, seq_len = 4, 8

    key = jax.random.PRNGKey(0)
    ks = jax.random.split(key, 9)
    s = 1.0 / jnp.sqrt(hidden_size)
    params = {
        "embed_weight": jax.random.normal(ks[0], (vocab_size, embed_size), jnp.float32),
        "w_ih": jax.random.uniform(ks[1], (4 * hidden_size, embed_size), jnp.float32, -s, s),
        "w_hh": jax.random.uniform(ks[2], (4 * hidden_size, hidden_size), jnp.float32, -s, s),
        "b_ih": jax.random.uniform(ks[3], (4 * hidden_size,), jnp.float32, -s, s),
        "b_hh": jax.random.uniform(ks[4], (4 * hidden_size,), jnp.float32, -s, s),
        "w_fc": jax.random.uniform(ks[5], (vocab_size, hidden_size), jnp.float32, -s, s),
        "b_fc": jax.random.uniform(ks[6], (vocab_size,), jnp.float32, -s, s),
    }
    features = jax.random.normal(ks[7], (batch, embed_size), jnp.float32)
    captions = jax.random.randint(ks[8], (batch, seq_len), 0, vocab_size, jnp.int32)

    prep = prepare_decoder_params(params)      # one-time weight prep (hoisted)
    fwd = jax.jit(decoder_rnn_forward, static_argnames=("out_vocab",))

    out = jax.block_until_ready(fwd(features, captions, prep, out_vocab=vocab_size))
    ref = jax.block_until_ready(_reference_forward(features, captions, params))

    assert out.shape == (batch, seq_len, vocab_size), out.shape
    # bf16 weights/activations in the kernels vs f32 reference -> small drift.
    err = float(jnp.max(jnp.abs(out - ref)))
    assert err < 5e-2, err
    print("KERNEL_OK")
</pallas_src>

<mosaic_0001>
module attributes {stable_mosaic.version = 11 : i64} {
  func.func @_matmul_bias_kernel(%arg0: i32, %arg1: i32, %arg2: memref<128x128xbf16, #tpu.memory_space<vmem>>, %arg3: memref<128x512xbf16, #tpu.memory_space<vmem>>, %arg4: memref<1x512xf32, #tpu.memory_space<vmem>>, %arg5: memref<128x512xf32, #tpu.memory_space<vmem>>) attributes {dimension_semantics = [#tpu.dimension_semantics<parallel>, #tpu.dimension_semantics<parallel>], iteration_bounds = array<i64: 1, 1>, scalar_prefetch = 0 : i64, scratch_operands = 0 : i64, tpu.core_type = #tpu.core_type<tc>, window_params = [{transform_indices = @transform_0, window_bounds = array<i64: 128, 128>}, {transform_indices = @transform_1, window_bounds = array<i64: 128, 512>}, {transform_indices = @transform_2, window_bounds = array<i64: 1, 512>}, {transform_indices = @transform_3, window_bounds = array<i64: 128, 512>}]} {
    %c0 = arith.constant 0 : index
    %c0_0 = arith.constant 0 : index
    %0 = vector.load %arg2[%c0, %c0_0] : memref<128x128xbf16, #tpu.memory_space<vmem>>, vector<128x128xbf16>
    %c0_1 = arith.constant 0 : index
    %c0_2 = arith.constant 0 : index
    %1 = vector.load %arg3[%c0_1, %c0_2] : memref<128x512xbf16, #tpu.memory_space<vmem>>, vector<128x512xbf16>
    %cst = arith.constant dense<0.000000e+00> : vector<128x512xf32>
    %2 = tpu.matmul %0, %1, %cst {dimension_numbers = #tpu.dot_dimension_numbers<[1], [0], [0], [1], [0, 0, 1, 1], [], []>} : vector<128x128xbf16>, vector<128x512xbf16>, vector<128x512xf32> -> vector<128x512xf32>
    %c0_3 = arith.constant 0 : index
    %c0_4 = arith.constant 0 : index
    %3 = vector.load %arg4[%c0_3, %c0_4] : memref<1x512xf32, #tpu.memory_space<vmem>>, vector<1x512xf32>
    %4 = vector.broadcast %3 : vector<1x512xf32> to vector<128x512xf32>
    %5 = arith.addf %2, %4 : vector<128x512xf32>
    %c0_5 = arith.constant 0 : index
    %c0_6 = arith.constant 0 : index
    %6 = vector.load %arg5[%c0_5, %c0_6] : memref<128x512xf32, #tpu.memory_space<vmem>>, vector<128x512xf32>
    tpu.vector_store %arg5[%c0_5, %c0_6], %5 {strides = array<i32>} : memref<128x512xf32, #tpu.memory_space<vmem>>, vector<128x512xf32>,
    return
  }
  func.func @transform_0(%arg0: i32, %arg1: i32) -> (i32, i32) {
    %c0_i32 = arith.constant 0 : i32
    %c0_i32_0 = arith.constant 0 : i32
    return %arg1, %c0_i32 : i32, i32
  }
  func.func @transform_1(%arg0: i32, %arg1: i32) -> (i32, i32) {
    %c0_i32 = arith.constant 0 : i32
    %c0_i32_0 = arith.constant 0 : i32
    return %c0_i32, %arg0 : i32, i32
  }
  func.func @transform_2(%arg0: i32, %arg1: i32) -> (i32, i32) {
    %c0_i32 = arith.constant 0 : i32
    %c0_i32_0 = arith.constant 0 : i32
    return %c0_i32, %arg0 : i32, i32
  }
  func.func @transform_3(%arg0: i32, %arg1: i32) -> (i32, i32) {
    %c0_i32 = arith.constant 0 : i32
    return %arg1, %arg0 : i32, i32
  }
}

module attributes {stable_mosaic.version = 11 : i64} {
  func.func @_lstm_kernel(%arg0: i32, %arg1: memref<16x4096xf32, #tpu.memory_space<vmem>>, %arg2: memref<128x512xbf16, #tpu.memory_space<vmem>>, %arg3: memref<16x1024xbf16, #tpu.memory_space<vmem>>, %arg4: memref<16x128xbf16, #tpu.memory_space<vmem>>, %arg5: memref<16x128xf32, #tpu.memory_space<vmem>>) attributes {dimension_semantics = [#tpu.dimension_semantics<arbitrary>], iteration_bounds = array<i64: 1>, scalar_prefetch = 0 : i64, scratch_operands = 2 : i64, tpu.core_type = #tpu.core_type<tc>, window_params = [{transform_indices = @transform_0, window_bounds = array<i64: 16, 4096>}, {pipeline_mode = #tpu.pipeline_mode<synchronous>, transform_indices = @transform_1, window_bounds = array<i64: 128, 512>}, {transform_indices = @transform_2, window_bounds = array<i64: 16, 1024>}]} {
    %c0_i32 = arith.constant 0 : i32
    %0 = arith.cmpi eq, %arg0, %c0_i32 : i32
    %1 = arith.extui %0 : i1 to i32
    %c0_i32_0 = arith.constant 0 : i32
    %2 = arith.cmpi ne, %1, %c0_i32_0 : i32
    scf.if %2 {
      %cst_142 = arith.constant 0.000000e+00 : bf16
      %331 = vector.broadcast %cst_142 : bf16 to vector<16x128xbf16>
      %c0_143 = arith.constant 0 : index
      %c0_144 = arith.constant 0 : index
      %332 = vector.load %arg4[%c0_143, %c0_144] : memref<16x128xbf16, #tpu.memory_space<vmem>>, vector<16x128xbf16>
      tpu.vector_store %arg4[%c0_143, %c0_144], %331 {strides = array<i32>} : memref<16x128xbf16, #tpu.memory_space<vmem>>, vector<16x128xbf16>,
      %cst_145 = arith.constant 0.000000e+00 : f32
      %333 = vector.broadcast %cst_145 : f32 to vector<16x128xf32>
      %c0_146 = arith.constant 0 : index
      %c0_147 = arith.constant 0 : index
      %334 = vector.load %arg5[%c0_146, %c0_147] : memref<16x128xf32, #tpu.memory_space<vmem>>, vector<16x128xf32>
      tpu.vector_store %arg5[%c0_146, %c0_147], %333 {strides = array<i32>} : memref<16x128xf32, #tpu.memory_space<vmem>>, vector<16x128xf32>,
    } else {
    }
    %c0_i32_1 = arith.constant 0 : i32
    %c512_i32 = arith.constant 512 : i32
    %3 = arith.muli %c0_i32_1, %c512_i32 : i32
    %4 = tpu.assume_multiple %3, 512 : i32
    %c0 = arith.constant 0 : index
    %5 = arith.index_cast %4 : i32 to index
    %6 = vector.load %arg1[%c0, %5] : memref<16x4096xf32, #tpu.memory_space<vmem>>, vector<16x512xf32>
    %c0_2 = arith.constant 0 : index
    %c0_3 = arith.constant 0 : index
    %7 = vector.load %arg4[%c0_2, %c0_3] : memref<16x128xbf16, #tpu.memory_space<vmem>>, vector<16x128xbf16>
    %c0_4 = arith.constant 0 : index
    %c0_5 = arith.constant 0 : index
    %8 = vector.load %arg2[%c0_4, %c0_5] : memref<128x512xbf16, #tpu.memory_space<vmem>>, vector<128x512xbf16>
    %cst = arith.constant dense<0.000000e+00> : vector<16x512xf32>
    %9 = tpu.matmul %7, %8, %cst {dimension_numbers = #tpu.dot_dimension_numbers<[1], [0], [0], [1], [0, 0, 1, 1], [], []>} : vector<16x128xbf16>, vector<128x512xbf16>, vector<16x512xf32> -> vector<16x512xf32>
    %10 = arith.addf %6, %9 : vector<16x512xf32>
    %11 = vector.extract_strided_slice %10 {offsets = [0, 0], sizes = [16, 128], strides = [1, 1]} : vector<16x512xf32> to vector<16x128xf32>
    %12 = arith.negf %11 : vector<16x128xf32>
    %13 = math.exp %12 : vector<16x128xf32>
    %cst_6 = arith.constant 1.000000e+00 : f32
    %14 = vector.broadcast %cst_6 : f32 to vector<16x128xf32>
    %15 = arith.addf %14, %13 : vector<16x128xf32>
    %16 = arith.divf %14, %15 : vector<16x128xf32>
    %17 = vector.extract_strided_slice %10 {offsets = [0, 128], sizes = [16, 128], strides = [1, 1]} : vector<16x512xf32> to vector<16x128xf32>
    %18 = arith.negf %17 : vector<16x128xf32>
    %19 = math.exp %18 : vector<16x128xf32>
    %cst_7 = arith.constant 1.000000e+00 : f32
    %20 = vector.broadcast %cst_7 : f32 to vector<16x128xf32>
    %21 = arith.addf %20, %19 : vector<16x128xf32>
    %22 = arith.divf %20, %21 : vector<16x128xf32>
    %23 = vector.extract_strided_slice %10 {offsets = [0, 256], sizes = [16, 128], strides = [1, 1]} : vector<16x512xf32> to vector<16x128xf32>
    %24 = math.tanh %23 : vector<16x128xf32>
    %25 = vector.extract_strided_slice %10 {offsets = [0, 384], sizes = [16, 128], strides = [1, 1]} : vector<16x512xf32> to vector<16x128xf32>
    %26 = arith.negf %25 : vector<16x128xf32>
    %27 = math.exp %26 : vector<16x128xf32>
    %cst_8 = arith.constant 1.000000e+00 : f32
    %28 = vector.broadcast %cst_8 : f32 to vector<16x128xf32>
    %29 = arith.addf %28, %27 : vector<16x128xf32>
    %30 = arith.divf %28, %29 : vector<16x128xf32>
    %c0_9 = arith.constant 0 : index
    %c0_10 = arith.constant 0 : index
    %31 = vector.load %arg5[%c0_9, %c0_10] : memref<16x128xf32, #tpu.memory_space<vmem>>, vector<16x128xf32>
    %32 = arith.mulf %22, %31 : vector<16x128xf32>
    %33 = arith.mulf %16, %24 : vector<16x128xf32>
    %34 = arith.addf %32, %33 : vector<16x128xf32>
    %35 = math.tanh %34 : vector<16x128xf32>
    %36 = arith.mulf %30, %35 : vector<16x128xf32>
    %c0_11 = arith.constant 0 : index
    %c0_12 = arith.constant 0 : index
    %37 = vector.load %arg5[%c0_11, %c0_12] : memref<16x128xf32, #tpu.memory_space<vmem>>, vector<16x128xf32>
    tpu.vector_store %arg5[%c0_11, %c0_12], %34 {strides = array<i32>} : memref<16x128xf32, #tpu.memory_space<vmem>>, vector<16x128xf32>,
    %38 = arith.truncf %36 : vector<16x128xf32> to vector<16x128xbf16>
    %c0_13 = arith.constant 0 : index
    %c0_14 = arith.constant 0 : index
    %39 = vector.load %arg4[%c0_13, %c0_14] : memref<16x128xbf16, #tpu.memory_space<vmem>>, vector<16x128xbf16>
    tpu.vector_store %arg4[%c0_13, %c0_14], %38 {strides = array<i32>} : memref<16x128xbf16, #tpu.memory_space<vmem>>, vector<16x128xbf16>,
    %c128_i32 = arith.constant 128 : i32
    %40 = arith.muli %c0_i32_1, %c128_i32 : i32
    %41 = tpu.assume_multiple %40, 128 : i32
    %c0_15 = arith.constant 0 : index
    %42 = arith.index_cast %41 : i32 to index
    %43 = vector.load %arg3[%c0_15, %42] : memref<16x1024xbf16, #tpu.memory_space<vmem>>, vector<16x128xbf16>
    tpu.vector_store %arg3[%c0_15, %42], %38 {strides = array<i32>} : memref<16x1024xbf16, #tpu.memory_space<vmem>>, vector<16x128xbf16>,
    %c1_i32 = arith.constant 1 : i32
    %c512_i32_16 = arith.constant 512 : i32
    %44 = arith.muli %c1_i32, %c512_i32_16 : i32
    %45 = tpu.assume_multiple %44, 512 : i32
    %c0_17 = arith.constant 0 : index
    %46 = arith.index_cast %45 : i32 to index
    %47 = vector.load %arg1[%c0_17, %46] : memref<16x4096xf32, #tpu.memory_space<vmem>>, vector<16x512xf32>
    %c0_18 = arith.constant 0 : index
    %c0_19 = arith.constant 0 : index
    %48 = vector.load %arg4[%c0_18, %c0_19] : memref<16x128xbf16, #tpu.memory_space<vmem>>, vector<16x128xbf16>
    %c0_20 = arith.constant 0 : index
    %c0_21 = arith.constant 0 : index
    %49 = vector.load %arg2[%c0_20, %c0_21] : memref<128x512xbf16, #tpu.memory_space<vmem>>, vector<128x512xbf16>
    %cst_22 = arith.constant dense<0.000000e+00> : vector<16x512xf32>
    %50 = tpu.matmul %48, %49, %cst_22 {dimension_numbers = #tpu.dot_dimension_numbers<[1], [0], [0], [1], [0, 0, 1, 1], [], []>} : vector<16x128xbf16>, vector<128x512xbf16>, vector<16x512xf32> -> vector<16x512xf32>
    %51 = arith.addf %47, %50 : vector<16x512xf32>
    %52 = vector.extract_strided_slice %51 {offsets = [0, 0], sizes = [16, 128], strides = [1, 1]} : vector<16x512xf32> to vector<16x128xf32>
    %53 = arith.negf %52 : vector<16x128xf32>
    %54 = math.exp %53 : vector<16x128xf32>
    %cst_23 = arith.constant 1.000000e+00 : f32
    %55 = vector.broadcast %cst_23 : f32 to vector<16x128xf32>
    %56 = arith.addf %55, %54 : vector<16x128xf32>
    %57 = arith.divf %55, %56 : vector<16x128xf32>
    %58 = vector.extract_strided_slice %51 {offsets = [0, 128], sizes = [16, 128], strides = [1, 1]} : vector<16x512xf32> to vector<16x128xf32>
    %59 = arith.negf %58 : vector<16x128xf32>
    %60 = math.exp %59 : vector<16x128xf32>
    %cst_24 = arith.constant 1.000000e+00 : f32
    %61 = vector.broadcast %cst_24 : f32 to vector<16x128xf32>
    %62 = arith.addf %61, %60 : vector<16x128xf32>
    %63 = arith.divf %61, %62 : vector<16x128xf32>
    %64 = vector.extract_strided_slice %51 {offsets = [0, 256], sizes = [16, 128], strides = [1, 1]} : vector<16x512xf32> to vector<16x128xf32>
    %65 = math.tanh %64 : vector<16x128xf32>
    %66 = vector.extract_strided_slice %51 {offsets = [0, 384], sizes = [16, 128], strides = [1, 1]} : vector<16x512xf32> to vector<16x128xf32>
    %67 = arith.negf %66 : vector<16x128xf32>
    %68 = math.exp %67 : vector<16x128xf32>
    %cst_25 = arith.constant 1.000000e+00 : f32
    %69 = vector.broadcast %cst_25 : f32 to vector<16x128xf32>
    %70 = arith.addf %69, %68 : vector<16x128xf32>
    %71 = arith.divf %69, %70 : vector<16x128xf32>
    %c0_26 = arith.constant 0 : index
    %c0_27 = arith.constant 0 : index
    %72 = vector.load %arg5[%c0_26, %c0_27] : memref<16x128xf32, #tpu.memory_space<vmem>>, vector<16x128xf32>
    %73 = arith.mulf %63, %72 : vector<16x128xf32>
    %74 = arith.mulf %57, %65 : vector<16x128xf32>
    %75 = arith.addf %73, %74 : vector<16x128xf32>
    %76 = math.tanh %75 : vector<16x128xf32>
    %77 = arith.mulf %71, %76 : vector<16x128xf32>
    %c0_28 = arith.constant 0 : index
    %c0_29 = arith.constant 0 : index
    %78 = vector.load %arg5[%c0_28, %c0_29] : memref<16x128xf32, #tpu.memory_space<vmem>>, vector<16x128xf32>
    tpu.vector_store %arg5[%c0_28, %c0_29], %75 {strides = array<i32>} : memref<16x128xf32, #tpu.memory_space<vmem>>, vector<16x128xf32>,
    %79 = arith.truncf %77 : vector<16x128xf32> to vector<16x128xbf16>
    %c0_30 = arith.constant 0 : index
    %c0_31 = arith.constant 0 : index
    %80 = vector.load %arg4[%c0_30, %c0_31] : memref<16x128xbf16, #tpu.memory_space<vmem>>, vector<16x128xbf16>
    tpu.vector_store %arg4[%c0_30, %c0_31], %79 {strides = array<i32>} : memref<16x128xbf16, #tpu.memory_space<vmem>>, vector<16x128xbf16>,
    %c128_i32_32 = arith.constant 128 : i32
    %81 = arith.muli %c1_i32, %c128_i32_32 : i32
    %82 = tpu.assume_multiple %81, 128 : i32
    %c0_33 = arith.constant 0 : index
    %83 = arith.index_cast %82 : i32 to index
    %84 = vector.load %arg3[%c0_33, %83] : memref<16x1024xbf16, #tpu.memory_space<vmem>>, vector<16x128xbf16>
    tpu.vector_store %arg3[%c0_33, %83], %79 {strides = array<i32>} : memref<16x1024xbf16, #tpu.memory_space<vmem>>, vector<16x128xbf16>,
    %c2_i32 = arith.constant 2 : i32
    %c512_i32_34 = arith.constant 512 : i32
    %85 = arith.muli %c2_i32, %c512_i32_34 : i32
    %86 = tpu.assume_multiple %85, 512 : i32
    %c0_35 = arith.constant 0 : index
    %87 = arith.index_cast %86 : i32 to index
    %88 = vector.load %arg1[%c0_35, %87] : memref<16x4096xf32, #tpu.memory_space<vmem>>, vector<16x512xf32>
    %c0_36 = arith.constant 0 : index
    %c0_37 = arith.constant 0 : index
    %89 = vector.load %arg4[%c0_36, %c0_37] : memref<16x128xbf16, #tpu.memory_space<vmem>>, vector<16x128xbf16>
    %c0_38 = arith.constant 0 : index
    %c0_39 = arith.constant 0 : index
    %90 = vector.load %arg2[%c0_38, %c0_39] : memref<128x512xbf16, #tpu.memory_space<vmem>>, vector<128x512xbf16>
    %cst_40 = arith.constant dense<0.000000e+00> : vector<16x512xf32>
    %91 = tpu.matmul %89, %90, %cst_40 {dimension_numbers = #tpu.dot_dimension_numbers<[1], [0], [0], [1], [0, 0, 1, 1], [], []>} : vector<16x128xbf16>, vector<128x512xbf16>, vector<16x512xf32> -> vector<16x512xf32>
    %92 = arith.addf %88, %91 : vector<16x512xf32>
    %93 = vector.extract_strided_slice %92 {offsets = [0, 0], sizes = [16, 128], strides = [1, 1]} : vector<16x512xf32> to vector<16x128xf32>
    %94 = arith.negf %93 : vector<16x128xf32>
    %95 = math.exp %94 : vector<16x128xf32>
    %cst_41 = arith.constant 1.000000e+00 : f32
    %96 = vector.broadcast %cst_41 : f32 to vector<16x128xf32>
    %97 = arith.addf %96, %95 : vector<16x128xf32>
    %98 = arith.divf %96, %97 : vector<16x128xf32>
    %99 = vector.extract_strided_slice %92 {offsets = [0, 128], sizes = [16, 128], strides = [1, 1]} : vector<16x512xf32> to vector<16x128xf32>
    %100 = arith.negf %99 : vector<16x128xf32>
    %101 = math.exp %100 : vector<16x128xf32>
    %cst_42 = arith.constant 1.000000e+00 : f32
    %102 = vector.broadcast %cst_42 : f32 to vector<16x128xf32>
    %103 = arith.addf %102, %101 : vector<16x128xf32>
    %104 = arith.divf %102, %103 : vector<16x128xf32>
    %105 = vector.extract_strided_slice %92 {offsets = [0, 256], sizes = [16, 128], strides = [1, 1]} : vector<16x512xf32> to vector<16x128xf32>
    %106 = math.tanh %105 : vector<16x128xf32>
    %107 = vector.extract_strided_slice %92 {offsets = [0, 384], sizes = [16, 128], strides = [1, 1]} : vector<16x512xf32> to vector<16x128xf32>
    %108 = arith.negf %107 : vector<16x128xf32>
    %109 = math.exp %108 : vector<16x128xf32>
    %cst_43 = arith.constant 1.000000e+00 : f32
    %110 = vector.broadcast %cst_43 : f32 to vector<16x128xf32>
    %111 = arith.addf %110, %109 : vector<16x128xf32>
    %112 = arith.divf %110, %111 : vector<16x128xf32>
    %c0_44 = arith.constant 0 : index
    %c0_45 = arith.constant 0 : index
    %113 = vector.load %arg5[%c0_44, %c0_45] : memref<16x128xf32, #tpu.memory_space<vmem>>, vector<16x128xf32>
    %114 = arith.mulf %104, %113 : vector<16x128xf32>
    %115 = arith.mulf %98, %106 : vector<16x128xf32>
    %116 = arith.addf %114, %115 : vector<16x128xf32>
    %117 = math.tanh %116 : vector<16x128xf32>
    %118 = arith.mulf %112, %117 : vector<16x128xf32>
    %c0_46 = arith.constant 0 : index
    %c0_47 = arith.constant 0 : index
    %119 = vector.load %arg5[%c0_46, %c0_47] : memref<16x128xf32, #tpu.memory_space<vmem>>, vector<16x128xf32>
    tpu.vector_store %arg5[%c0_46, %c0_47], %116 {strides = array<i32>} : memref<16x128xf32, #tpu.memory_space<vmem>>, vector<16x128xf32>,
    %120 = arith.truncf %118 : vector<16x128xf32> to vector<16x128xbf16>
    %c0_48 = arith.constant 0 : index
    %c0_49 = arith.constant 0 : index
    %121 = vector.load %arg4[%c0_48, %c0_49] : memref<16x128xbf16, #tpu.memory_space<vmem>>, vector<16x128xbf16>
    tpu.vector_store %arg4[%c0_48, %c0_49], %120 {strides = array<i32>} : memref<16x128xbf16, #tpu.memory_space<vmem>>, vector<16x128xbf16>,
    %c128_i32_50 = arith.constant 128 : i32
    %122 = arith.muli %c2_i32, %c128_i32_50 : i32
    %123 = tpu.assume_multiple %122, 128 : i32
    %c0_51 = arith.constant 0 : index
    %124 = arith.index_cast %123 : i32 to index
    %125 = vector.load %arg3[%c0_51, %124] : memref<16x1024xbf16, #tpu.memory_space<vmem>>, vector<16x128xbf16>
    tpu.vector_store %arg3[%c0_51, %124], %120 {strides = array<i32>} : memref<16x1024xbf16, #tpu.memory_space<vmem>>, vector<16x128xbf16>,
    %c3_i32 = arith.constant 3 : i32
    %c512_i32_52 = arith.constant 512 : i32
    %126 = arith.muli %c3_i32, %c512_i32_52 : i32
    %127 = tpu.assume_multiple %126, 512 : i32
    %c0_53 = arith.constant 0 : index
    %128 = arith.index_cast %127 : i32 to index
    %129 = vector.load %arg1[%c0_53, %128] : memref<16x4096xf32, #tpu.memory_space<vmem>>, vector<16x512xf32>
    %c0_54 = arith.constant 0 : index
    %c0_55 = arith.constant 0 : index
    %130 = vector.load %arg4[%c0_54, %c0_55] : memref<16x128xbf16, #tpu.memory_space<vmem>>, vector<16x128xbf16>
    %c0_56 = arith.constant 0 : index
    %c0_57 = arith.constant 0 : index
    %131 = vector.load %arg2[%c0_56, %c0_57] : memref<128x512xbf16, #tpu.memory_space<vmem>>, vector<128x512xbf16>
    %cst_58 = arith.constant dense<0.000000e+00> : vector<16x512xf32>
    %132 = tpu.matmul %130, %131, %cst_58 {dimension_numbers = #tpu.dot_dimension_numbers<[1], [0], [0], [1], [0, 0, 1, 1], [], []>} : vector<16x128xbf16>, vector<128x512xbf16>, vector<16x512xf32> -> vector<16x512xf32>
    %133 = arith.addf %129, %132 : vector<16x512xf32>
    %134 = vector.extract_strided_slice %133 {offsets = [0, 0], sizes = [16, 128], strides = [1, 1]} : vector<16x512xf32> to vector<16x128xf32>
    %135 = arith.negf %134 : vector<16x128xf32>
    %136 = math.exp %135 : vector<16x128xf32>
    %cst_59 = arith.constant 1.000000e+00 : f32
    %137 = vector.broadcast %cst_59 : f32 to vector<16x128xf32>
    %138 = arith.addf %137, %136 : vector<16x128xf32>
    %139 = arith.divf %137, %138 : vector<16x128xf32>
    %140 = vector.extract_strided_slice %133 {offsets = [0, 128], sizes = [16, 128], strides = [1, 1]} : vector<16x512xf32> to vector<16x128xf32>
    %141 = arith.negf %140 : vector<16x128xf32>
    %142 = math.exp %141 : vector<16x128xf32>
    %cst_60 = arith.constant 1.000000e+00 : f32
    %143 = vector.broadcast %cst_60 : f32 to vector<16x128xf32>
    %144 = arith.addf %143, %142 : vector<16x128xf32>
    %145 = arith.divf %143, %144 : vector<16x128xf32>
    %146 = vector.extract_strided_slice %133 {offsets = [0, 256], sizes = [16, 128], strides = [1, 1]} : vector<16x512xf32> to vector<16x128xf32>
    %147 = math.tanh %146 : vector<16x128xf32>
    %148 = vector.extract_strided_slice %133 {offsets = [0, 384], sizes = [16, 128], strides = [1, 1]} : vector<16x512xf32> to vector<16x128xf32>
    %149 = arith.negf %148 : vector<16x128xf32>
    %150 = math.exp %149 : vector<16x128xf32>
    %cst_61 = arith.constant 1.000000e+00 : f32
    %151 = vector.broadcast %cst_61 : f32 to vector<16x128xf32>
    %152 = arith.addf %151, %150 : vector<16x128xf32>
    %153 = arith.divf %151, %152 : vector<16x128xf32>
    %c0_62 = arith.constant 0 : index
    %c0_63 = arith.constant 0 : index
    %154 = vector.load %arg5[%c0_62, %c0_63] : memref<16x128xf32, #tpu.memory_space<vmem>>, vector<16x128xf32>
    %155 = arith.mulf %145, %154 : vector<16x128xf32>
    %156 = arith.mulf %139, %147 : vector<16x128xf32>
    %157 = arith.addf %155, %156 : vector<16x128xf32>
    %158 = math.tanh %157 : vector<16x128xf32>
    %159 = arith.mulf %153, %158 : vector<16x128xf32>
    %c0_64 = arith.constant 0 : index
    %c0_65 = arith.constant 0 : index
    %160 = vector.load %arg5[%c0_64, %c0_65] : memref<16x128xf32, #tpu.memory_space<vmem>>, vector<16x128xf32>
    tpu.vector_store %arg5[%c0_64, %c0_65], %157 {strides = array<i32>} : memref<16x128xf32, #tpu.memory_space<vmem>>, vector<16x128xf32>,
    %161 = arith.truncf %159 : vector<16x128xf32> to vector<16x128xbf16>
    %c0_66 = arith.constant 0 : index
    %c0_67 = arith.constant 0 : index
    %162 = vector.load %arg4[%c0_66, %c0_67] : memref<16x128xbf16, #tpu.memory_space<vmem>>, vector<16x128xbf16>
    tpu.vector_store %arg4[%c0_66, %c0_67], %161 {strides = array<i32>} : memref<16x128xbf16, #tpu.memory_space<vmem>>, vector<16x128xbf16>,
    %c128_i32_68 = arith.constant 128 : i32
    %163 = arith.muli %c3_i32, %c128_i32_68 : i32
    %164 = tpu.assume_multiple %163, 128 : i32
    %c0_69 = arith.constant 0 : index
    %165 = arith.index_cast %164 : i32 to index
    %166 = vector.load %arg3[%c0_69, %165] : memref<16x1024xbf16, #tpu.memory_space<vmem>>, vector<16x128xbf16>
    tpu.vector_store %arg3[%c0_69, %165], %161 {strides = array<i32>} : memref<16x1024xbf16, #tpu.memory_space<vmem>>, vector<16x128xbf16>,
    %c4_i32 = arith.constant 4 : i32
    %c512_i32_70 = arith.constant 512 : i32
    %167 = arith.muli %c4_i32, %c512_i32_70 : i32
    %168 = tpu.assume_multiple %167, 512 : i32
    %c0_71 = arith.constant 0 : index
    %169 = arith.index_cast %168 : i32 to index
    %170 = vector.load %arg1[%c0_71, %169] : memref<16x4096xf32, #tpu.memory_space<vmem>>, vector<16x512xf32>
    %c0_72 = arith.constant 0 : index
    %c0_73 = arith.constant 0 : index
    %171 = vector.load %arg4[%c0_72, %c0_73] : memref<16x128xbf16, #tpu.memory_space<vmem>>, vector<16x128xbf16>
    %c0_74 = arith.constant 0 : index
    %c0_75 = arith.constant 0 : index
    %172 = vector.load %arg2[%c0_74, %c0_75] : memref<128x512xbf16, #tpu.memory_space<vmem>>, vector<128x512xbf16>
    %cst_76 = arith.constant dense<0.000000e+00> : vector<16x512xf32>
    %173 = tpu.matmul %171, %172, %cst_76 {dimension_numbers = #tpu.dot_dimension_numbers<[1], [0], [0], [1], [0, 0, 1, 1], [], []>} : vector<16x128xbf16>, vector<128x512xbf16>, vector<16x512xf32> -> vector<16x512xf32>
    %174 = arith.addf %170, %173 : vector<16x512xf32>
    %175 = vector.extract_strided_slice %174 {offsets = [0, 0], sizes = [16, 128], strides = [1, 1]} : vector<16x512xf32> to vector<16x128xf32>
    %176 = arith.negf %175 : vector<16x128xf32>
    %177 = math.exp %176 : vector<16x128xf32>
    %cst_77 = arith.constant 1.000000e+00 : f32
    %178 = vector.broadcast %cst_77 : f32 to vector<16x128xf32>
    %179 = arith.addf %178, %177 : vector<16x128xf32>
    %180 = arith.divf %178, %179 : vector<16x128xf32>
    %181 = vector.extract_strided_slice %174 {offsets = [0, 128], sizes = [16, 128], strides = [1, 1]} : vector<16x512xf32> to vector<16x128xf32>
    %182 = arith.negf %181 : vector<16x128xf32>
    %183 = math.exp %182 : vector<16x128xf32>
    %cst_78 = arith.constant 1.000000e+00 : f32
    %184 = vector.broadcast %cst_78 : f32 to vector<16x128xf32>
    %185 = arith.addf %184, %183 : vector<16x128xf32>
    %186 = arith.divf %184, %185 : vector<16x128xf32>
    %187 = vector.extract_strided_slice %174 {offsets = [0, 256], sizes = [16, 128], strides = [1, 1]} : vector<16x512xf32> to vector<16x128xf32>
    %188 = math.tanh %187 : vector<16x128xf32>
    %189 = vector.extract_strided_slice %174 {offsets = [0, 384], sizes = [16, 128], strides = [1, 1]} : vector<16x512xf32> to vector<16x128xf32>
    %190 = arith.negf %189 : vector<16x128xf32>
    %191 = math.exp %190 : vector<16x128xf32>
    %cst_79 = arith.constant 1.000000e+00 : f32
    %192 = vector.broadcast %cst_79 : f32 to vector<16x128xf32>
    %193 = arith.addf %192, %191 : vector<16x128xf32>
    %194 = arith.divf %192, %193 : vector<16x128xf32>
    %c0_80 = arith.constant 0 : index
    %c0_81 = arith.constant 0 : index
    %195 = vector.load %arg5[%c0_80, %c0_81] : memref<16x128xf32, #tpu.memory_space<vmem>>, vector<16x128xf32>
    %196 = arith.mulf %186, %195 : vector<16x128xf32>
    %197 = arith.mulf %180, %188 : vector<16x128xf32>
    %198 = arith.addf %196, %197 : vector<16x128xf32>
    %199 = math.tanh %198 : vector<16x128xf32>
    %200 = arith.mulf %194, %199 : vector<16x128xf32>
    %c0_82 = arith.constant 0 : index
    %c0_83 = arith.constant 0 : index
    %201 = vector.load %arg5[%c0_82, %c0_83] : memref<16x128xf32, #tpu.memory_space<vmem>>, vector<16x128xf32>
    tpu.vector_store %arg5[%c0_82, %c0_83], %198 {strides = array<i32>} : memref<16x128xf32, #tpu.memory_space<vmem>>, vector<16x128xf32>,
    %202 = arith.truncf %200 : vector<16x128xf32> to vector<16x128xbf16>
    %c0_84 = arith.constant 0 : index
    %c0_85 = arith.constant 0 : index
    %203 = vector.load %arg4[%c0_84, %c0_85] : memref<16x128xbf16, #tpu.memory_space<vmem>>, vector<16x128xbf16>
    tpu.vector_store %arg4[%c0_84, %c0_85], %202 {strides = array<i32>} : memref<16x128xbf16, #tpu.memory_space<vmem>>, vector<16x128xbf16>,
    %c128_i32_86 = arith.constant 128 : i32
    %204 = arith.muli %c4_i32, %c128_i32_86 : i32
    %205 = tpu.assume_multiple %204, 128 : i32
    %c0_87 = arith.constant 0 : index
    %206 = arith.index_cast %205 : i32 to index
    %207 = vector.load %arg3[%c0_87, %206] : memref<16x1024xbf16, #tpu.memory_space<vmem>>, vector<16x128xbf16>
    tpu.vector_store %arg3[%c0_87, %206], %202 {strides = array<i32>} : memref<16x1024xbf16, #tpu.memory_space<vmem>>, vector<16x128xbf16>,
    %c5_i32 = arith.constant 5 : i32
    %c512_i32_88 = arith.constant 512 : i32
    %208 = arith.muli %c5_i32, %c512_i32_88 : i32
    %209 = tpu.assume_multiple %208, 512 : i32
    %c0_89 = arith.constant 0 : index
    %210 = arith.index_cast %209 : i32 to index
    %211 = vector.load %arg1[%c0_89, %210] : memref<16x4096xf32, #tpu.memory_space<vmem>>, vector<16x512xf32>
    %c0_90 = arith.constant 0 : index
    %c0_91 = arith.constant 0 : index
    %212 = vector.load %arg4[%c0_90, %c0_91] : memref<16x128xbf16, #tpu.memory_space<vmem>>, vector<16x128xbf16>
    %c0_92 = arith.constant 0 : index
    %c0_93 = arith.constant 0 : index
    %213 = vector.load %arg2[%c0_92, %c0_93] : memref<128x512xbf16, #tpu.memory_space<vmem>>, vector<128x512xbf16>
    %cst_94 = arith.constant dense<0.000000e+00> : vector<16x512xf32>
    %214 = tpu.matmul %212, %213, %cst_94 {dimension_numbers = #tpu.dot_dimension_numbers<[1], [0], [0], [1], [0, 0, 1, 1], [], []>} : vector<16x128xbf16>, vector<128x512xbf16>, vector<16x512xf32> -> vector<16x512xf32>
    %215 = arith.addf %211, %214 : vector<16x512xf32>
    %216 = vector.extract_strided_slice %215 {offsets = [0, 0], sizes = [16, 128], strides = [1, 1]} : vector<16x512xf32> to vector<16x128xf32>
    %217 = arith.negf %216 : vector<16x128xf32>
    %218 = math.exp %217 : vector<16x128xf32>
    %cst_95 = arith.constant 1.000000e+00 : f32
    %219 = vector.broadcast %cst_95 : f32 to vector<16x128xf32>
    %220 = arith.addf %219, %218 : vector<16x128xf32>
    %221 = arith.divf %219, %220 : vector<16x128xf32>
    %222 = vector.extract_strided_slice %215 {offsets = [0, 128], sizes = [16, 128], strides = [1, 1]} : vector<16x512xf32> to vector<16x128xf32>
    %223 = arith.negf %222 : vector<16x128xf32>
    %224 = math.exp %223 : vector<16x128xf32>
    %cst_96 = arith.constant 1.000000e+00 : f32
    %225 = vector.broadcast %cst_96 : f32 to vector<16x128xf32>
    %226 = arith.addf %225, %224 : vector<16x128xf32>
    %227 = arith.divf %225, %226 : vector<16x128xf32>
    %228 = vector.extract_strided_slice %215 {offsets = [0, 256], sizes = [16, 128], strides = [1, 1]} : vector<16x512xf32> to vector<16x128xf32>
    %229 = math.tanh %228 : vector<16x128xf32>
    %230 = vector.extract_strided_slice %215 {offsets = [0, 384], sizes = [16, 128], strides = [1, 1]} : vector<16x512xf32> to vector<16x128xf32>
    %231 = arith.negf %230 : vector<16x128xf32>
    %232 = math.exp %231 : vector<16x128xf32>
    %cst_97 = arith.constant 1.000000e+00 : f32
    %233 = vector.broadcast %cst_97 : f32 to vector<16x128xf32>
    %234 = arith.addf %233, %232 : vector<16x128xf32>
    %235 = arith.divf %233, %234 : vector<16x128xf32>
    %c0_98 = arith.constant 0 : index
    %c0_99 = arith.constant 0 : index
    %236 = vector.load %arg5[%c0_98, %c0_99] : memref<16x128xf32, #tpu.memory_space<vmem>>, vector<16x128xf32>
    %237 = arith.mulf %227, %236 : vector<16x128xf32>
    %238 = arith.mulf %221, %229 : vector<16x128xf32>
    %239 = arith.addf %237, %238 : vector<16x128xf32>
    %240 = math.tanh %239 : vector<16x128xf32>
    %241 = arith.mulf %235, %240 : vector<16x128xf32>
    %c0_100 = arith.constant 0 : index
    %c0_101 = arith.constant 0 : index
    %242 = vector.load %arg5[%c0_100, %c0_101] : memref<16x128xf32, #tpu.memory_space<vmem>>, vector<16x128xf32>
    tpu.vector_store %arg5[%c0_100, %c0_101], %239 {strides = array<i32>} : memref<16x128xf32, #tpu.memory_space<vmem>>, vector<16x128xf32>,
    %243 = arith.truncf %241 : vector<16x128xf32> to vector<16x128xbf16>
    %c0_102 = arith.constant 0 : index
    %c0_103 = arith.constant 0 : index
    %244 = vector.load %arg4[%c0_102, %c0_103] : memref<16x128xbf16, #tpu.memory_space<vmem>>, vector<16x128xbf16>
    tpu.vector_store %arg4[%c0_102, %c0_103], %243 {strides = array<i32>} : memref<16x128xbf16, #tpu.memory_space<vmem>>, vector<16x128xbf16>,
    %c128_i32_104 = arith.constant 128 : i32
    %245 = arith.muli %c5_i32, %c128_i32_104 : i32
    %246 = tpu.assume_multiple %245, 128 : i32
    %c0_105 = arith.constant 0 : index
    %247 = arith.index_cast %246 : i32 to index
    %248 = vector.load %arg3[%c0_105, %247] : memref<16x1024xbf16, #tpu.memory_space<vmem>>, vector<16x128xbf16>
    tpu.vector_store %arg3[%c0_105, %247], %243 {strides = array<i32>} : memref<16x1024xbf16, #tpu.memory_space<vmem>>, vector<16x128xbf16>,
    %c6_i32 = arith.constant 6 : i32
    %c512_i32_106 = arith.constant 512 : i32
    %249 = arith.muli %c6_i32, %c512_i32_106 : i32
    %250 = tpu.assume_multiple %249, 512 : i32
    %c0_107 = arith.constant 0 : index
    %251 = arith.index_cast %250 : i32 to index
    %252 = vector.load %arg1[%c0_107, %251] : memref<16x4096xf32, #tpu.memory_space<vmem>>, vector<16x512xf32>
    %c0_108 = arith.constant 0 : index
    %c0_109 = arith.constant 0 : index
    %253 = vector.load %arg4[%c0_108, %c0_109] : memref<16x128xbf16, #tpu.memory_space<vmem>>, vector<16x128xbf16>
    %c0_110 = arith.constant 0 : index
    %c0_111 = arith.constant 0 : index
    %254 = vector.load %arg2[%c0_110, %c0_111] : memref<128x512xbf16, #tpu.memory_space<vmem>>, vector<128x512xbf16>
    %cst_112 = arith.constant dense<0.000000e+00> : vector<16x512xf32>
    %255 = tpu.matmul %253, %254, %cst_112 {dimension_numbers = #tpu.dot_dimension_numbers<[1], [0], [0], [1], [0, 0, 1, 1], [], []>} : vector<16x128xbf16>, vector<128x512xbf16>, vector<16x512xf32> -> vector<16x512xf32>
    %256 = arith.addf %252, %255 : vector<16x512xf32>
    %257 = vector.extract_strided_slice %256 {offsets = [0, 0], sizes = [16, 128], strides = [1, 1]} : vector<16x512xf32> to vector<16x128xf32>
    %258 = arith.negf %257 : vector<16x128xf32>
    %259 = math.exp %258 : vector<16x128xf32>
    %cst_113 = arith.constant 1.000000e+00 : f32
    %260 = vector.broadcast %cst_113 : f32 to vector<16x128xf32>
    %261 = arith.addf %260, %259 : vector<16x128xf32>
    %262 = arith.divf %260, %261 : vector<16x128xf32>
    %263 = vector.extract_strided_slice %256 {offsets = [0, 128], sizes = [16, 128], strides = [1, 1]} : vector<16x512xf32> to vector<16x128xf32>
    %264 = arith.negf %263 : vector<16x128xf32>
    %265 = math.exp %264 : vector<16x128xf32>
    %cst_114 = arith.constant 1.000000e+00 : f32
    %266 = vector.broadcast %cst_114 : f32 to vector<16x128xf32>
    %267 = arith.addf %266, %265 : vector<16x128xf32>
    %268 = arith.divf %266, %267 : vector<16x128xf32>
    %269 = vector.extract_strided_slice %256 {offsets = [0, 256], sizes = [16, 128], strides = [1, 1]} : vector<16x512xf32> to vector<16x128xf32>
    %270 = math.tanh %269 : vector<16x128xf32>
    %271 = vector.extract_strided_slice %256 {offsets = [0, 384], sizes = [16, 128], strides = [1, 1]} : vector<16x512xf32> to vector<16x128xf32>
    %272 = arith.negf %271 : vector<16x128xf32>
    %273 = math.exp %272 : vector<16x128xf32>
    %cst_115 = arith.constant 1.000000e+00 : f32
    %274 = vector.broadcast %cst_115 : f32 to vector<16x128xf32>
    %275 = arith.addf %274, %273 : vector<16x128xf32>
    %276 = arith.divf %274, %275 : vector<16x128xf32>
    %c0_116 = arith.constant 0 : index
    %c0_117 = arith.constant 0 : index
    %277 = vector.load %arg5[%c0_116, %c0_117] : memref<16x128xf32, #tpu.memory_space<vmem>>, vector<16x128xf32>
    %278 = arith.mulf %268, %277 : vector<16x128xf32>
    %279 = arith.mulf %262, %270 : vector<16x128xf32>
    %280 = arith.addf %278, %279 : vector<16x128xf32>
    %281 = math.tanh %280 : vector<16x128xf32>
    %282 = arith.mulf %276, %281 : vector<16x128xf32>
    %c0_118 = arith.constant 0 : index
    %c0_119 = arith.constant 0 : index
    %283 = vector.load %arg5[%c0_118, %c0_119] : memref<16x128xf32, #tpu.memory_space<vmem>>, vector<16x128xf32>
    tpu.vector_store %arg5[%c0_118, %c0_119], %280 {strides = array<i32>} : memref<16x128xf32, #tpu.memory_space<vmem>>, vector<16x128xf32>,
    %284 = arith.truncf %282 : vector<16x128xf32> to vector<16x128xbf16>
    %c0_120 = arith.constant 0 : index
    %c0_121 = arith.constant 0 : index
    %285 = vector.load %arg4[%c0_120, %c0_121] : memref<16x128xbf16, #tpu.memory_space<vmem>>, vector<16x128xbf16>
    tpu.vector_store %arg4[%c0_120, %c0_121], %284 {strides = array<i32>} : memref<16x128xbf16, #tpu.memory_space<vmem>>, vector<16x128xbf16>,
    %c128_i32_122 = arith.constant 128 : i32
    %286 = arith.muli %c6_i32, %c128_i32_122 : i32
    %287 = tpu.assume_multiple %286, 128 : i32
    %c0_123 = arith.constant 0 : index
    %288 = arith.index_cast %287 : i32 to index
    %289 = vector.load %arg3[%c0_123, %288] : memref<16x1024xbf16, #tpu.memory_space<vmem>>, vector<16x128xbf16>
    tpu.vector_store %arg3[%c0_123, %288], %284 {strides = array<i32>} : memref<16x1024xbf16, #tpu.memory_space<vmem>>, vector<16x128xbf16>,
    %c7_i32 = arith.constant 7 : i32
    %c512_i32_124 = arith.constant 512 : i32
    %290 = arith.muli %c7_i32, %c512_i32_124 : i32
    %291 = tpu.assume_multiple %290, 512 : i32
    %c0_125 = arith.constant 0 : index
    %292 = arith.index_cast %291 : i32 to index
    %293 = vector.load %arg1[%c0_125, %292] : memref<16x4096xf32, #tpu.memory_space<vmem>>, vector<16x512xf32>
    %c0_126 = arith.constant 0 : index
    %c0_127 = arith.constant 0 : index
    %294 = vector.load %arg4[%c0_126, %c0_127] : memref<16x128xbf16, #tpu.memory_space<vmem>>, vector<16x128xbf16>
    %c0_128 = arith.constant 0 : index
    %c0_129 = arith.constant 0 : index
    %295 = vector.load %arg2[%c0_128, %c0_129] : memref<128x512xbf16, #tpu.memory_space<vmem>>, vector<128x512xbf16>
    %cst_130 = arith.constant dense<0.000000e+00> : vector<16x512xf32>
    %296 = tpu.matmul %294, %295, %cst_130 {dimension_numbers = #tpu.dot_dimension_numbers<[1], [0], [0], [1], [0, 0, 1, 1], [], []>} : vector<16x128xbf16>, vector<128x512xbf16>, vector<16x512xf32> -> vector<16x512xf32>
    %297 = arith.addf %293, %296 : vector<16x512xf32>
    %298 = vector.extract_strided_slice %297 {offsets = [0, 0], sizes = [16, 128], strides = [1, 1]} : vector<16x512xf32> to vector<16x128xf32>
    %299 = arith.negf %298 : vector<16x128xf32>
    %300 = math.exp %299 : vector<16x128xf32>
    %cst_131 = arith.constant 1.000000e+00 : f32
    %301 = vector.broadcast %cst_131 : f32 to vector<16x128xf32>
    %302 = arith.addf %301, %300 : vector<16x128xf32>
    %303 = arith.divf %301, %302 : vector<16x128xf32>
    %304 = vector.extract_strided_slice %297 {offsets = [0, 128], sizes = [16, 128], strides = [1, 1]} : vector<16x512xf32> to vector<16x128xf32>
    %305 = arith.negf %304 : vector<16x128xf32>
    %306 = math.exp %305 : vector<16x128xf32>
    %cst_132 = arith.constant 1.000000e+00 : f32
    %307 = vector.broadcast %cst_132 : f32 to vector<16x128xf32>
    %308 = arith.addf %307, %306 : vector<16x128xf32>
    %309 = arith.divf %307, %308 : vector<16x128xf32>
    %310 = vector.extract_strided_slice %297 {offsets = [0, 256], sizes = [16, 128], strides = [1, 1]} : vector<16x512xf32> to vector<16x128xf32>
    %311 = math.tanh %310 : vector<16x128xf32>
    %312 = vector.extract_strided_slice %297 {offsets = [0, 384], sizes = [16, 128], strides = [1, 1]} : vector<16x512xf32> to vector<16x128xf32>
    %313 = arith.negf %312 : vector<16x128xf32>
    %314 = math.exp %313 : vector<16x128xf32>
    %cst_133 = arith.constant 1.000000e+00 : f32
    %315 = vector.broadcast %cst_133 : f32 to vector<16x128xf32>
    %316 = arith.addf %315, %314 : vector<16x128xf32>
    %317 = arith.divf %315, %316 : vector<16x128xf32>
    %c0_134 = arith.constant 0 : index
    %c0_135 = arith.constant 0 : index
    %318 = vector.load %arg5[%c0_134, %c0_135] : memref<16x128xf32, #tpu.memory_space<vmem>>, vector<16x128xf32>
    %319 = arith.mulf %309, %318 : vector<16x128xf32>
    %320 = arith.mulf %303, %311 : vector<16x128xf32>
    %321 = arith.addf %319, %320 : vector<16x128xf32>
    %322 = math.tanh %321 : vector<16x128xf32>
    %323 = arith.mulf %317, %322 : vector<16x128xf32>
    %c0_136 = arith.constant 0 : index
    %c0_137 = arith.constant 0 : index
    %324 = vector.load %arg5[%c0_136, %c0_137] : memref<16x128xf32, #tpu.memory_space<vmem>>, vector<16x128xf32>
    tpu.vector_store %arg5[%c0_136, %c0_137], %321 {strides = array<i32>} : memref<16x128xf32, #tpu.memory_space<vmem>>, vector<16x128xf32>,
    %325 = arith.truncf %323 : vector<16x128xf32> to vector<16x128xbf16>
    %c0_138 = arith.constant 0 : index
    %c0_139 = arith.constant 0 : index
    %326 = vector.load %arg4[%c0_138, %c0_139] : memref<16x128xbf16, #tpu.memory_space<vmem>>, vector<16x128xbf16>
    tpu.vector_store %arg4[%c0_138, %c0_139], %325 {strides = array<i32>} : memref<16x128xbf16, #tpu.memory_space<vmem>>, vector<16x128xbf16>,
    %c128_i32_140 = arith.constant 128 : i32
    %327 = arith.muli %c7_i32, %c128_i32_140 : i32
    %328 = tpu.assume_multiple %327, 128 : i32
    %c0_141 = arith.constant 0 : index
    %329 = arith.index_cast %328 : i32 to index
    %330 = vector.load %arg3[%c0_141, %329] : memref<16x1024xbf16, #tpu.memory_space<vmem>>, vector<16x128xbf16>
    tpu.vector_store %arg3[%c0_141, %329], %325 {strides = array<i32>} : memref<16x1024xbf16, #tpu.memory_space<vmem>>, vector<16x128xbf16>,
    %c8_i32 = arith.constant 8 : i32
    return
  }
  func.func @transform_0(%arg0: i32) -> (i32, i32) {
    %c0_i32 = arith.constant 0 : i32
    %c0_i32_0 = arith.constant 0 : i32
    return %c0_i32, %arg0 : i32, i32
  }
  func.func @transform_1(%arg0: i32) -> (i32, i32) {
    %c0_i32 = arith.constant 0 : i32
    %c0_i32_0 = arith.constant 0 : i32
    %c0_i32_1 = arith.constant 0 : i32
    return %c0_i32, %c0_i32_0 : i32, i32
  }
  func.func @transform_2(%arg0: i32) -> (i32, i32) {
    %c0_i32 = arith.constant 0 : i32
    %c0_i32_0 = arith.constant 0 : i32
    return %c0_i32, %arg0 : i32, i32
  }
}

module attributes {stable_mosaic.version = 11 : i64} {
  func.func @_matmul_bias_kernel(%arg0: i32, %arg1: i32, %arg2: memref<128x128xbf16, #tpu.memory_space<vmem>>, %arg3: memref<128x128xbf16, #tpu.memory_space<vmem>>, %arg4: memref<1x128xf32, #tpu.memory_space<vmem>>, %arg5: memref<128x128xf32, #tpu.memory_space<vmem>>) attributes {dimension_semantics = [#tpu.dimension_semantics<parallel>, #tpu.dimension_semantics<parallel>], iteration_bounds = array<i64: 1, 1>, scalar_prefetch = 0 : i64, scratch_operands = 0 : i64, tpu.core_type = #tpu.core_type<tc>, window_params = [{transform_indices = @transform_0, window_bounds = array<i64: 128, 128>}, {transform_indices = @transform_1, window_bounds = array<i64: 128, 128>}, {transform_indices = @transform_2, window_bounds = array<i64: 1, 128>}, {transform_indices = @transform_3, window_bounds = array<i64: 128, 128>}]} {
    %c0 = arith.constant 0 : index
    %c0_0 = arith.constant 0 : index
    %0 = vector.load %arg2[%c0, %c0_0] : memref<128x128xbf16, #tpu.memory_space<vmem>>, vector<128x128xbf16>
    %c0_1 = arith.constant 0 : index
    %c0_2 = arith.constant 0 : index
    %1 = vector.load %arg3[%c0_1, %c0_2] : memref<128x128xbf16, #tpu.memory_space<vmem>>, vector<128x128xbf16>
    %cst = arith.constant dense<0.000000e+00> : vector<128x128xf32>
    %2 = tpu.matmul %0, %1, %cst {dimension_numbers = #tpu.dot_dimension_numbers<[1], [0], [0], [1], [0, 0, 1, 1], [], []>} : vector<128x128xbf16>, vector<128x128xbf16>, vector<128x128xf32> -> vector<128x128xf32>
    %c0_3 = arith.constant 0 : index
    %c0_4 = arith.constant 0 : index
    %3 = vector.load %arg4[%c0_3, %c0_4] : memref<1x128xf32, #tpu.memory_space<vmem>>, vector<1x128xf32>
    %4 = vector.broadcast %3 : vector<1x128xf32> to vector<128x128xf32>
    %5 = arith.addf %2, %4 : vector<128x128xf32>
    %c0_5 = arith.constant 0 : index
    %c0_6 = arith.constant 0 : index
    %6 = vector.load %arg5[%c0_5, %c0_6] : memref<128x128xf32, #tpu.memory_space<vmem>>, vector<128x128xf32>
    tpu.vector_store %arg5[%c0_5, %c0_6], %5 {strides = array<i32>} : memref<128x128xf32, #tpu.memory_space<vmem>>, vector<128x128xf32>,
    return
  }
  func.func @transform_0(%arg0: i32, %arg1: i32) -> (i32, i32) {
    %c0_i32 = arith.constant 0 : i32
    %c0_i32_0 = arith.constant 0 : i32
    return %arg1, %c0_i32 : i32, i32
  }
  func.func @transform_1(%arg0: i32, %arg1: i32) -> (i32, i32) {
    %c0_i32 = arith.constant 0 : i32
    %c0_i32_0 = arith.constant 0 : i32
    return %c0_i32, %arg0 : i32, i32
  }
  func.func @transform_2(%arg0: i32, %arg1: i32) -> (i32, i32) {
    %c0_i32 = arith.constant 0 : i32
    %c0_i32_0 = arith.constant 0 : i32
    return %c0_i32, %arg0 : i32, i32
  }
  func.func @transform_3(%arg0: i32, %arg1: i32) -> (i32, i32) {
    %c0_i32 = arith.constant 0 : i32
    return %arg1, %arg0 : i32, i32
  }
}

</mosaic_0001>

<bundles_post_ra>
// kernel: decoder_rnn_forward.5
= control target key start
LH: loop header
LB: loop body
LE: loop exit
PB: predicated region body
PF: predicated region fallthrough
CT: control target
= control target key end

     0   :  { %s483_s1 = inlined_call_operand.vmem [shape: bf16[128,128], index: 1, kind: input, shape index: {}]   ;;  %s484_s0 = inlined_call_operand.vmem [shape: bf16[128,128], index: 0, kind: input, shape index: {}]   ;;  %s485_s2 = inlined_call_operand.vmem [shape: f32[1,128], index: 2, kind: input, shape index: {}]   ;;  %s486_s3 = inlined_call_operand.vmem [shape: f32[128,128], index: 3, kind: output, shape index: {}]  }
   0x1   :  { %v348_v0 = vld [vmem:[%s483_s1] sm:$0xff]   ;;  %v349_v1 = vld [vmem:[%s483_s1 + $0x8] sm:$0xff]   ;;  %v350_v2 = vld [vmem:[%s483_s1 + $0x10] sm:$0xff]  }
   0x2   :  { %300 = vmatprep.subr.bf16.mxu0 %v348_v0  ;;  %332 = vmatprep.subr.bf16.mxu1 %v348_v0  ;;  %v351_v3 = vld [vmem:[%s483_s1 + $0x18] sm:$0xff]   ;;  %v356_v4 = vld [vmem:[%s484_s0] sm:$0xff]   ;;  %v353_v7 = vld [vmem:[%s483_s1 + $0x28] sm:$0xff]  }
   0x3   :  { %301 = vmatpush3.bf16.msra.mxu0 %v348_v0  ;;  %340 = vmatpush3.bf16.msra.mxu1 %v348_v0  ;;  %v357_v5 = vld [vmem:[%s484_s0 + $0x20] sm:$0xff]   ;;  %v354_v8 = vld [vmem:[%s483_s1 + $0x30] sm:$0xff]   ;;  %v355_v9 = vld [vmem:[%s483_s1 + $0x38] sm:$0xff]  }
   0x4   :  { %302 = vmatprep.subr.bf16.mxu0 %v349_v1  ;;  %333 = vmatprep.subr.bf16.mxu1 %v349_v1  ;;  %v352_v6 = vld [vmem:[%s483_s1 + $0x20] sm:$0xff]   ;;  %v358_v10 = vld [vmem:[%s484_s0 + $0x8] sm:$0xff]   ;;  %v360_v12 = vld [vmem:[%s484_s0 + $0x10] sm:$0xff]  }
   0x5   :  { %316 = vmatprep.mubr.bf16.mxu0 %v356_v4  ;;  %324 = vmatprep.mubr.bf16.mxu1 %v357_v5  ;;  %v359_v11 = vld [vmem:[%s484_s0 + $0x28] sm:$0xff]   ;;  %v361_v13 = vld [vmem:[%s484_s0 + $0x30] sm:$0xff]   ;;  %v362_v14 = vld [vmem:[%s484_s0 + $0x18] sm:$0xff]  }
   0x6   :  { %v363_v15 = vld [vmem:[%s484_s0 + $0x38] sm:$0xff]   ;;  %v267_v16 = vld [vmem:[%s485_s2] ss:$0 sm:$0xff] }
   0x7   :  { %303 = vmatpush3.bf16.msra.mxu0 %v349_v1  ;;  %341 = vmatpush3.bf16.msra.mxu1 %v349_v1 }
   0x8   :  { %304 = vmatprep.subr.bf16.mxu0 %v350_v2  ;;  %334 = vmatprep.subr.bf16.mxu1 %v350_v2 }
   0xb   :  { %305 = vmatpush3.bf16.msra.mxu0 %v350_v2  ;;  %342 = vmatpush3.bf16.msra.mxu1 %v350_v2 }
   0xc   :  { %306 = vmatprep.subr.bf16.mxu0 %v351_v3  ;;  %335 = vmatprep.subr.bf16.mxu1 %v351_v3 }
   0xf   :  { %307 = vmatpush3.bf16.msra.mxu0 %v351_v3  ;;  %343 = vmatpush3.bf16.msra.mxu1 %v351_v3 }
  0x10   :  { %308 = vmatprep.subr.bf16.mxu0 %v352_v6  ;;  %336 = vmatprep.subr.bf16.mxu1 %v352_v6 }
  0x13   :  { %309 = vmatpush3.bf16.msra.mxu0 %v352_v6  ;;  %344 = vmatpush3.bf16.msra.mxu1 %v352_v6 }
  0x14   :  { %310 = vmatprep.subr.bf16.mxu0 %v353_v7  ;;  %337 = vmatprep.subr.bf16.mxu1 %v353_v7 }
  0x17   :  { %311 = vmatpush3.bf16.msra.mxu0 %v353_v7  ;;  %345 = vmatpush3.bf16.msra.mxu1 %v353_v7 }
  0x18   :  { %312 = vmatprep.subr.bf16.mxu0 %v354_v8  ;;  %338 = vmatprep.subr.bf16.mxu1 %v354_v8 }
  0x1b   :  { %313 = vmatpush3.bf16.msra.mxu0 %v354_v8  ;;  %346 = vmatpush3.bf16.msra.mxu1 %v354_v8 }
  0x1c   :  { %314 = vmatprep.subr.bf16.mxu0 %v355_v9  ;;  %339 = vmatprep.subr.bf16.mxu1 %v355_v9 }
  0x1f   :  { %315 = vmatpush3.bf16.msra.mxu0 %v355_v9  ;;  %347 = vmatpush3.bf16.msra.mxu1 %v355_v9 }
  0x22   :  { %317 = vmatmul.mubr.bf16.vlgmr.msra.gmra.mrb[0].mxu0 %v358_v10  ;;  %325 = vmatmul.mubr.bf16.vlgmr.msra.gmra.mrb[0].mxu1 %v359_v11 }
  0x23   :  { %320 = vmatprep.mubr.bf16.mxu0 %v360_v12  ;;  %328 = vmatprep.mubr.bf16.mxu1 %v361_v13 }
  0x2a   :  { %321 = vmatmul.mubr.bf16.gmra.mrb[4].mxu0 %v362_v14  ;;  %329 = vmatmul.mubr.bf16.gmra.mrb[4].mxu1 %v363_v15 }
  0xf5   :  { %v318_v17 = vpop.f32.mrb[0].mxu0  ;;  %v326_v18 = vpop.f32.mrb[0].mxu1 }
  0xf6   :  { %v193_v19 = vadd.f32 %v318_v17, %v267_v16  ;;  %v225_v20 = vadd.f32 %v326_v18, %v267_v16  ;;  %v184_v21 = vpop.f32.mrb[1].mxu0  ;;  %v216_v22 = vpop.f32.mrb[1].mxu1 }
  0xf7   :  { %v185_v23 = vadd.f32 %v267_v16, %v184_v21  ;;  %v217_v24 = vadd.f32 %v267_v16, %v216_v22  ;;  %v319_v25 = vpop.f32.mrb[2].mxu0  ;;  %v327_v26 = vpop.f32.mrb[2].mxu1 }
  0xf8   :  { %249 = vst [vmem:[%s486_s3 + $0x10] sm:$0xff] %v193_v19  ;;  %257 = vst [vmem:[%s486_s3 + $0x50] sm:$0xff] %v225_v20  ;;  %v196_v27 = vadd.f32 %v319_v25, %v267_v16  ;;  %v228_v28 = vadd.f32 %v327_v26, %v267_v16  ;;  %v187_v29 = vpop.f32.mrb[3].mxu0  ;;  %v219_v30 = vpop.f32.mrb[3].mxu1 }
  0xf9   :  { %247 = vst [vmem:[%s486_s3] sm:$0xff] %v185_v23  ;;  %255 = vst [vmem:[%s486_s3 + $0x40] sm:$0xff] %v217_v24  ;;  %v188_v31 = vadd.f32 %v267_v16, %v187_v29  ;;  %v220_v32 = vadd.f32 %v267_v16, %v219_v30 }
  0xfa   :  { %250 = vst [vmem:[%s486_s3 + $0x18] sm:$0xff] %v196_v27  ;;  %258 = vst [vmem:[%s486_s3 + $0x58] sm:$0xff] %v228_v28 }
  0xfb   :  { %248 = vst [vmem:[%s486_s3 + $0x8] sm:$0xff] %v188_v31  ;;  %256 = vst [vmem:[%s486_s3 + $0x48] sm:$0xff] %v220_v32 }
  0xfd   :  { %v322_v33 = vpop.f32.mrb[4].mxu0  ;;  %v330_v34 = vpop.f32.mrb[4].mxu1 }
  0xfe   :  { %v209_v35 = vadd.f32 %v322_v33, %v267_v16  ;;  %v241_v36 = vadd.f32 %v330_v34, %v267_v16  ;;  %v200_v37 = vpop.f32.mrb[5].mxu0  ;;  %v232_v38 = vpop.f32.mrb[5].mxu1 }
  0xff   :  { %v201_v39 = vadd.f32 %v267_v16, %v200_v37  ;;  %v233_v40 = vadd.f32 %v267_v16, %v232_v38  ;;  %v323_v41 = vpop.f32.mrb[6].mxu0  ;;  %v331_v42 = vpop.f32.mrb[6].mxu1 }
 0x100   :  { %253 = vst [vmem:[%s486_s3 + $0x30] sm:$0xff] %v209_v35  ;;  %261 = vst [vmem:[%s486_s3 + $0x70] sm:$0xff] %v241_v36  ;;  %v212_v43 = vadd.f32 %v323_v41, %v267_v16  ;;  %v244_v44 = vadd.f32 %v331_v42, %v267_v16  ;;  %v203_v45 = vpop.f32.mrb[7].mxu0  ;;  %v235_v46 = vpop.f32.mrb[7].mxu1 }
 0x101   :  { %251 = vst [vmem:[%s486_s3 + $0x20] sm:$0xff] %v201_v39  ;;  %259 = vst [vmem:[%s486_s3 + $0x60] sm:$0xff] %v233_v40  ;;  %v204_v47 = vadd.f32 %v267_v16, %v203_v45  ;;  %v236_v48 = vadd.f32 %v267_v16, %v235_v46 }
 0x102   :  { %254 = vst [vmem:[%s486_s3 + $0x38] sm:$0xff] %v212_v43  ;;  %262 = vst [vmem:[%s486_s3 + $0x78] sm:$0xff] %v244_v44 }
 0x103   :  { %252 = vst [vmem:[%s486_s3 + $0x28] sm:$0xff] %v204_v47  ;;  %260 = vst [vmem:[%s486_s3 + $0x68] sm:$0xff] %v236_v48 }

// kernel: decoder_rnn_forward.3
= control target key start
LH: loop header
LB: loop body
LE: loop exit
PB: predicated region body
PF: predicated region fallthrough
CT: control target
= control target key end

     0   :  { %v684_v1 = vmov 0   ;;  %v65_v41 = vlaneseq  ;;  %s1108_s1 = inlined_call_operand.vmem [shape: bf16[128,512], index: 1, kind: input, shape index: {}]   ;;  %s1109_s0 = inlined_call_operand.vmem [shape: bf16[128,128], index: 0, kind: input, shape index: {}]   ;;  %s1110_s2 = inlined_call_operand.vmem [shape: f32[1,512], index: 2, kind: input, shape index: {}]   ;;  %s1111_s3 = inlined_call_operand.vmem [shape: f32[128,512], index: 3, kind: output, shape index: {}]  }
   0x1   :  { %v628_v0 = vld [vmem:[%s1108_s1 + $0x4] ss:$16 sps:$4 sm:$0xff]   ;;  %325 = vmatprep.mubr.bf16.mxu0 %v684_v1  ;;  %438 = vmatprep.mubr.bf16.mxu1 %v684_v1  ;;  %v630_v2 = vld [vmem:[%s1108_s1 + $0xc] ss:$16 sps:$4 sm:$0xff]   ;;  %v632_v3 = vld [vmem:[%s1108_s1] ss:$16 sps:$4 sm:$0xff]  }
   0x2   :  { %293 = vmatprep.subr.bf16.mxu0 %v628_v0  ;;  %v633_v4 = vld [vmem:[%s1108_s1 + $0x8] ss:$16 sps:$4 sm:$0xff]   ;;  %406 = vmatprep.subr.bf16.mxu1 %v630_v2  ;;  %v634_v5 = vld [vmem:[%s1108_s1 + $0x24] ss:$16 sps:$4 sm:$0xff]   ;;  %v636_v6 = vld [vmem:[%s1108_s1 + $0x2c] ss:$16 sps:$4 sm:$0xff]  }
   0x3   :  { %294 = vmatpush1.bf16.msra.mxu0 %v632_v3  ;;  %407 = vmatpush1.bf16.msra.mxu1 %v633_v4  ;;  %v638_v7 = vld [vmem:[%s1108_s1 + $0x20] ss:$16 sps:$4 sm:$0xff]   ;;  %v639_v8 = vld [vmem:[%s1108_s1 + $0x28] ss:$16 sps:$4 sm:$0xff]   ;;  %v640_v9 = vld [vmem:[%s1108_s1 + $0x44] ss:$16 sps:$4 sm:$0xff]  }
   0x4   :  { %295 = vmatprep.subr.bf16.mxu0 %v634_v5  ;;  %408 = vmatprep.subr.bf16.mxu1 %v636_v6  ;;  %v642_v10 = vld [vmem:[%s1108_s1 + $0x4c] ss:$16 sps:$4 sm:$0xff]   ;;  %v644_v11 = vld [vmem:[%s1108_s1 + $0x40] ss:$16 sps:$4 sm:$0xff]   ;;  %v645_v12 = vld [vmem:[%s1108_s1 + $0x48] ss:$16 sps:$4 sm:$0xff]  }
   0x5   :  { %v646_v13 = vld [vmem:[%s1108_s1 + $0x64] ss:$16 sps:$4 sm:$0xff]   ;;  %v648_v14 = vld [vmem:[%s1108_s1 + $0x6c] ss:$16 sps:$4 sm:$0xff]   ;;  %v650_v15 = vld [vmem:[%s1108_s1 + $0x60] ss:$16 sps:$4 sm:$0xff]  }
   0x6   :  { %v651_v16 = vld [vmem:[%s1108_s1 + $0x68] ss:$16 sps:$4 sm:$0xff]   ;;  %v652_v17 = vld [vmem:[%s1108_s1 + $0x84] ss:$16 sps:$4 sm:$0xff]   ;;  %v654_v18 = vld [vmem:[%s1108_s1 + $0x8c] ss:$16 sps:$4 sm:$0xff]  }
   0x7   :  { %296 = vmatpush1.bf16.msra.mxu0 %v638_v7  ;;  %409 = vmatpush1.bf16.msra.mxu1 %v639_v8  ;;  %v656_v19 = vld [vmem:[%s1108_s1 + $0x80] ss:$16 sps:$4 sm:$0xff]   ;;  %v657_v20 = vld [vmem:[%s1108_s1 + $0x88] ss:$16 sps:$4 sm:$0xff]   ;;  %v658_v21 = vld [vmem:[%s1108_s1 + $0xa4] ss:$16 sps:$4 sm:$0xff]  }
   0x8   :  { %297 = vmatprep.subr.bf16.mxu0 %v640_v9  ;;  %410 = vmatprep.subr.bf16.mxu1 %v642_v10  ;;  %v660_v22 = vld [vmem:[%s1108_s1 + $0xac] ss:$16 sps:$4 sm:$0xff]   ;;  %v662_v23 = vld [vmem:[%s1108_s1 + $0xa0] ss:$16 sps:$4 sm:$0xff]   ;;  %v663_v24 = vld [vmem:[%s1108_s1 + $0xa8] ss:$16 sps:$4 sm:$0xff]  }
   0x9   :  { %v664_v25 = vld [vmem:[%s1108_s1 + $0xc4] ss:$16 sps:$4 sm:$0xff]   ;;  %v666_v26 = vld [vmem:[%s1108_s1 + $0xcc] ss:$16 sps:$4 sm:$0xff]   ;;  %v668_v27 = vld [vmem:[%s1108_s1 + $0xc0] ss:$16 sps:$4 sm:$0xff]  }
   0xa   :  { %v669_v28 = vld [vmem:[%s1108_s1 + $0xc8] ss:$16 sps:$4 sm:$0xff]   ;;  %v670_v29 = vld [vmem:[%s1108_s1 + $0xe4] ss:$16 sps:$4 sm:$0xff]   ;;  %v672_v30 = vld [vmem:[%s1108_s1 + $0xec] ss:$16 sps:$4 sm:$0xff]  }
   0xb   :  { %298 = vmatpush1.bf16.msra.mxu0 %v644_v11  ;;  %411 = vmatpush1.bf16.msra.mxu1 %v645_v12  ;;  %v674_v31 = vld [vmem:[%s1108_s1 + $0xe0] ss:$16 sps:$4 sm:$0xff]   ;;  %v675_v32 = vld [vmem:[%s1108_s1 + $0xe8] ss:$16 sps:$4 sm:$0xff]   ;;  %v66_v42 = vshrl.u32 %v65_v41, 7 }
   0xc   :  { %299 = vmatprep.subr.bf16.mxu0 %v646_v13  ;;  %412 = vmatprep.subr.bf16.mxu1 %v648_v14  ;;  %v676_v33 = vld [vmem:[%s1109_s0] sm:$0xff]   ;;  %v677_v34 = vld [vmem:[%s1109_s0 + $0x8] sm:$0xff]   ;;  %v678_v35 = vld [vmem:[%s1109_s0 + $0x10] sm:$0xff]  }
   0xd   :  { %v679_v36 = vld [vmem:[%s1109_s0 + $0x18] sm:$0xff]   ;;  %v680_v37 = vld [vmem:[%s1109_s0 + $0x20] sm:$0xff]   ;;  %v681_v38 = vld [vmem:[%s1109_s0 + $0x28] sm:$0xff]   ;;  %v67_v43 = vsub.s32 0, %v66_v42  ;;  %v75_v44 = vsub.s32 2, %v66_v42  ;;  %v71_v46 = vsub.s32 1, %v66_v42 }
   0xe   :  { %v682_v39 = vld [vmem:[%s1109_s0 + $0x30] sm:$0xff]   ;;  %v683_v40 = vld [vmem:[%s1109_s0 + $0x38] sm:$0xff]   ;;  %v63_v45 = vld [vmem:[%s1110_s2] sm:$0xf]  ;;  %v79_v47 = vsub.s32 3, %v66_v42 }
   0xf   :  { %300 = vmatpush1.bf16.msra.mxu0 %v650_v15  ;;  %413 = vmatpush1.bf16.msra.mxu1 %v651_v16  ;;  %v844_v48 = vrot.slane %v63_v45, %v67_v43  ;;  %v846_v49 = vrot.slane %v63_v45, %v75_v44  ;;  %v848_v50 = vrot.slane %v63_v45, %v71_v46 }
  0x10   :  { %301 = vmatprep.subr.bf16.mxu0 %v652_v17  ;;  %414 = vmatprep.subr.bf16.mxu1 %v654_v18  ;;  %v850_v51 = vrot.slane %v63_v45, %v79_v47 }
  0x13   :  { %302 = vmatpush1.bf16.msra.mxu0 %v656_v19  ;;  %415 = vmatpush1.bf16.msra.mxu1 %v657_v20 }
  0x14   :  { %303 = vmatprep.subr.bf16.mxu0 %v658_v21  ;;  %416 = vmatprep.subr.bf16.mxu1 %v660_v22 }
  0x17   :  { %304 = vmatpush1.bf16.msra.mxu0 %v662_v23  ;;  %417 = vmatpush1.bf16.msra.mxu1 %v663_v24 }
  0x18   :  { %305 = vmatprep.subr.bf16.mxu0 %v664_v25  ;;  %418 = vmatprep.subr.bf16.mxu1 %v666_v26 }
  0x1b   :  { %306 = vmatpush1.bf16.msra.mxu0 %v668_v27  ;;  %419 = vmatpush1.bf16.msra.mxu1 %v669_v28 }
  0x1c   :  { %307 = vmatprep.subr.bf16.mxu0 %v670_v29  ;;  %420 = vmatprep.subr.bf16.mxu1 %v672_v30 }
  0x1f   :  { %308 = vmatpush1.bf16.msra.mxu0 %v674_v31  ;;  %421 = vmatpush1.bf16.msra.mxu1 %v675_v32 }
  0x22   :  { %326 = vmatmul.mubr.bf16.vlgmr.msra.gmra.mrb[0].mxu0 %v676_v33  ;;  %439 = vmatmul.mubr.bf16.vlgmr.msra.gmra.mrb[0].mxu1 %v676_v33 }
  0x23   :  { %335 = vmatprep.mubr.bf16.mxu0 %v684_v1  ;;  %448 = vmatprep.mubr.bf16.mxu1 %v684_v1 }
  0x2a   :  { %336 = vmatmul.mubr.bf16.gmra.mrb[4].mxu0 %v677_v34  ;;  %449 = vmatmul.mubr.bf16.gmra.mrb[4].mxu1 %v677_v34 }
  0x2b   :  { %345 = vmatprep.mubr.bf16.mxu0 %v684_v1  ;;  %458 = vmatprep.mubr.bf16.mxu1 %v684_v1 }
  0x32   :  { %346 = vmatmul.mubr.bf16.gmra.mrb[8].mxu0 %v678_v35  ;;  %459 = vmatmul.mubr.bf16.gmra.mrb[8].mxu1 %v678_v35 }
  0x33   :  { %355 = vmatprep.mubr.bf16.mxu0 %v684_v1  ;;  %468 = vmatprep.mubr.bf16.mxu1 %v684_v1 }
  0x3a   :  { %356 = vmatmul.mubr.bf16.gmra.mrb[12].mxu0 %v679_v36  ;;  %469 = vmatmul.mubr.bf16.gmra.mrb[12].mxu1 %v679_v36 }
  0x3b   :  { %365 = vmatprep.mubr.bf16.mxu0 %v684_v1  ;;  %478 = vmatprep.mubr.bf16.mxu1 %v684_v1 }
  0x42   :  { %366 = vmatmul.mubr.bf16.gmra.mrb[16].mxu0 %v680_v37  ;;  %479 = vmatmul.mubr.bf16.gmra.mrb[16].mxu1 %v680_v37 }
  0x43   :  { %375 = vmatprep.mubr.bf16.mxu0 %v684_v1  ;;  %488 = vmatprep.mubr.bf16.mxu1 %v684_v1 }
  0x4a   :  { %376 = vmatmul.mubr.bf16.gmra.mrb[20].mxu0 %v681_v38  ;;  %489 = vmatmul.mubr.bf16.gmra.mrb[20].mxu1 %v681_v38 }
  0x4b   :  { %385 = vmatprep.mubr.bf16.mxu0 %v684_v1  ;;  %498 = vmatprep.mubr.bf16.mxu1 %v684_v1 }
  0x52   :  { %386 = vmatmul.mubr.bf16.gmra.mrb[24].mxu0 %v682_v39  ;;  %499 = vmatmul.mubr.bf16.gmra.mrb[24].mxu1 %v682_v39 }
  0x53   :  { %395 = vmatprep.mubr.bf16.mxu0 %v684_v1  ;;  %508 = vmatprep.mubr.bf16.mxu1 %v684_v1 }
  0x5a   :  { %396 = vmatmul.mubr.bf16.gmra.mrb[28].mxu0 %v683_v40  ;;  %509 = vmatmul.mubr.bf16.gmra.mrb[28].mxu1 %v683_v40 }
  0xf5   :  { %v327_v52 = vpop.f32.mrb[0].mxu0  ;;  %v440_v53 = vpop.f32.mrb[0].mxu1 }
  0xf6   :  { %v328_v54 = vadd.f32 %v327_v52, %v844_v48  ;;  %v441_v55 = vadd.f32 %v440_v53, %v846_v49  ;;  %v329_v56 = vpop.f32.mrb[1].mxu0  ;;  %v442_v57 = vpop.f32.mrb[1].mxu1 }
  0xf7   :  { %v330_v58 = vadd.f32 %v329_v56, %v848_v50  ;;  %v443_v59 = vadd.f32 %v442_v57, %v850_v51  ;;  %v331_v60 = vpop.f32.mrb[2].mxu0  ;;  %v444_v61 = vpop.f32.mrb[2].mxu1 }
  0xf8   :  { %519 = vst [vmem:[%s1111_s3] sm:$0xff] %v328_v54  ;;  %521 = vst [vmem:[%s1111_s3 + $0x10] sm:$0xff] %v441_v55  ;;  %v332_v62 = vadd.f32 %v331_v60, %v844_v48  ;;  %v445_v63 = vadd.f32 %v444_v61, %v846_v49  ;;  %v333_v0 = vpop.f32.mrb[3].mxu0  ;;  %v446_v1 = vpop.f32.mrb[3].mxu1 }
  0xf9   :  { %520 = vst [vmem:[%s1111_s3 + $0x8] sm:$0xff] %v330_v58  ;;  %522 = vst [vmem:[%s1111_s3 + $0x18] sm:$0xff] %v443_v59  ;;  %v334_v2 = vadd.f32 %v333_v0, %v848_v50  ;;  %v447_v3 = vadd.f32 %v446_v1, %v850_v51 }
  0xfa   :  { %523 = vst [vmem:[%s1111_s3 + $0x20] sm:$0xff] %v332_v62  ;;  %525 = vst [vmem:[%s1111_s3 + $0x30] sm:$0xff] %v445_v63 }
  0xfb   :  { %524 = vst [vmem:[%s1111_s3 + $0x28] sm:$0xff] %v334_v2  ;;  %526 = vst [vmem:[%s1111_s3 + $0x38] sm:$0xff] %v447_v3 }
  0xfd   :  { %v337_v4 = vpop.f32.mrb[4].mxu0  ;;  %v450_v5 = vpop.f32.mrb[4].mxu1 }
  0xfe   :  { %v338_v6 = vadd.f32 %v337_v4, %v844_v48  ;;  %v451_v7 = vadd.f32 %v450_v5, %v846_v49  ;;  %v339_v8 = vpop.f32.mrb[5].mxu0  ;;  %v452_v9 = vpop.f32.mrb[5].mxu1 }
  0xff   :  { %v340_v10 = vadd.f32 %v339_v8, %v848_v50  ;;  %v453_v11 = vadd.f32 %v452_v9, %v850_v51  ;;  %v341_v12 = vpop.f32.mrb[6].mxu0  ;;  %v454_v13 = vpop.f32.mrb[6].mxu1 }
 0x100   :  { %527 = vst [vmem:[%s1111_s3 + $0x40] sm:$0xff] %v338_v6  ;;  %529 = vst [vmem:[%s1111_s3 + $0x50] sm:$0xff] %v451_v7  ;;  %v342_v14 = vadd.f32 %v341_v12, %v844_v48  ;;  %v455_v15 = vadd.f32 %v454_v13, %v846_v49  ;;  %v343_v16 = vpop.f32.mrb[7].mxu0  ;;  %v456_v17 = vpop.f32.mrb[7].mxu1 }
 0x101   :  { %528 = vst [vmem:[%s1111_s3 + $0x48] sm:$0xff] %v340_v10  ;;  %530 = vst [vmem:[%s1111_s3 + $0x58] sm:$0xff] %v453_v11  ;;  %v344_v18 = vadd.f32 %v343_v16, %v848_v50  ;;  %v457_v19 = vadd.f32 %v456_v17, %v850_v51 }
 0x102   :  { %531 = vst [vmem:[%s1111_s3 + $0x60] sm:$0xff] %v342_v14  ;;  %533 = vst [vmem:[%s1111_s3 + $0x70] sm:$0xff] %v455_v15 }
 0x103   :  { %532 = vst [vmem:[%s1111_s3 + $0x68] sm:$0xff] %v344_v18  ;;  %534 = vst [vmem:[%s1111_s3 + $0x78] sm:$0xff] %v457_v19 }
 0x105   :  { %v347_v20 = vpop.f32.mrb[8].mxu0  ;;  %v460_v21 = vpop.f32.mrb[8].mxu1 }
 0x106   :  { %v348_v22 = vadd.f32 %v347_v20, %v844_v48  ;;  %v461_v23 = vadd.f32 %v460_v21, %v846_v49  ;;  %v349_v24 = vpop.f32.mrb[9].mxu0  ;;  %v462_v25 = vpop.f32.mrb[9].mxu1 }
 0x107   :  { %v350_v26 = vadd.f32 %v349_v24, %v848_v50  ;;  %v463_v27 = vadd.f32 %v462_v25, %v850_v51  ;;  %v351_v28 = vpop.f32.mrb[10].mxu0  ;;  %v464_v29 = vpop.f32.mrb[10].mxu1 }
 0x108   :  { %535 = vst [vmem:[%s1111_s3 + $0x80] sm:$0xff] %v348_v22  ;;  %537 = vst [vmem:[%s1111_s3 + $0x90] sm:$0xff] %v461_v23  ;;  %v352_v30 = vadd.f32 %v351_v28, %v844_v48  ;;  %v465_v31 = vadd.f32 %v464_v29, %v846_v49  ;;  %v353_v32 = vpop.f32.mrb[11].mxu0  ;;  %v466_v33 = vpop.f32.mrb[11].mxu1 }
 0x109   :  { %536 = vst [vmem:[%s1111_s3 + $0x88] sm:$0xff] %v350_v26  ;;  %538 = vst [vmem:[%s1111_s3 + $0x98] sm:$0xff] %v463_v27  ;;  %v354_v34 = vadd.f32 %v353_v32, %v848_v50  ;;  %v467_v35 = vadd.f32 %v466_v33, %v850_v51 }
 0x10a   :  { %539 = vst [vmem:[%s1111_s3 + $0xa0] sm:$0xff] %v352_v30  ;;  %541 = vst [vmem:[%s1111_s3 + $0xb0] sm:$0xff] %v465_v31 }
 0x10b   :  { %540 = vst [vmem:[%s1111_s3 + $0xa8] sm:$0xff] %v354_v34  ;;  %542 = vst [vmem:[%s1111_s3 + $0xb8] sm:$0xff] %v467_v35 }
 0x10d   :  { %v357_v36 = vpop.f32.mrb[12].mxu0  ;;  %v470_v37 = vpop.f32.mrb[12].mxu1 }
 0x10e   :  { %v358_v38 = vadd.f32 %v357_v36, %v844_v48  ;;  %v471_v39 = vadd.f32 %v470_v37, %v846_v49  ;;  %v359_v40 = vpop.f32.mrb[13].mxu0  ;;  %v472_v41 = vpop.f32.mrb[13].mxu1 }
 0x10f   :  { %v360_v42 = vadd.f32 %v359_v40, %v848_v50  ;;  %v473_v43 = vadd.f32 %v472_v41, %v850_v51  ;;  %v361_v44 = vpop.f32.mrb[14].mxu0  ;;  %v474_v45 = vpop.f32.mrb[14].mxu1 }
 0x110   :  { %543 = vst [vmem:[%s1111_s3 + $0xc0] sm:$0xff] %v358_v38  ;;  %545 = vst [vmem:[%s1111_s3 + $0xd0] sm:$0xff] %v471_v39  ;;  %v362_v46 = vadd.f32 %v361_v44, %v844_v48  ;;  %v475_v47 = vadd.f32 %v474_v45, %v846_v49  ;;  %v363_v52 = vpop.f32.mrb[15].mxu0  ;;  %v476_v53 = vpop.f32.mrb[15].mxu1 }
 0x111   :  { %544 = vst [vmem:[%s1111_s3 + $0xc8] sm:$0xff] %v360_v42  ;;  %546 = vst [vmem:[%s1111_s3 + $0xd8] sm:$0xff] %v473_v43  ;;  %v364_v54 = vadd.f32 %v363_v52, %v848_v50  ;;  %v477_v55 = vadd.f32 %v476_v53, %v850_v51 }
 0x112   :  { %547 = vst [vmem:[%s1111_s3 + $0xe0] sm:$0xff] %v362_v46  ;;  %549 = vst [vmem:[%s1111_s3 + $0xf0] sm:$0xff] %v475_v47 }
 0x113   :  { %548 = vst [vmem:[%s1111_s3 + $0xe8] sm:$0xff] %v364_v54  ;;  %550 = vst [vmem:[%s1111_s3 + $0xf8] sm:$0xff] %v477_v55 }
 0x115   :  { %v367_v56 = vpop.f32.mrb[16].mxu0  ;;  %v480_v57 = vpop.f32.mrb[16].mxu1 }
 0x116   :  { %v368_v58 = vadd.f32 %v367_v56, %v844_v48  ;;  %v481_v59 = vadd.f32 %v480_v57, %v846_v49  ;;  %v369_v60 = vpop.f32.mrb[17].mxu0  ;;  %v482_v61 = vpop.f32.mrb[17].mxu1 }
 0x117   :  { %v370_v62 = vadd.f32 %v369_v60, %v848_v50  ;;  %v483_v63 = vadd.f32 %v482_v61, %v850_v51  ;;  %v371_v0 = vpop.f32.mrb[18].mxu0  ;;  %v484_v1 = vpop.f32.mrb[18].mxu1 }
 0x118   :  { %551 = vst [vmem:[%s1111_s3 + $0x100] sm:$0xff] %v368_v58  ;;  %553 = vst [vmem:[%s1111_s3 + $0x110] sm:$0xff] %v481_v59  ;;  %v372_v2 = vadd.f32 %v371_v0, %v844_v48  ;;  %v485_v3 = vadd.f32 %v484_v1, %v846_v49  ;;  %v373_v4 = vpop.f32.mrb[19].mxu0  ;;  %v486_v5 = vpop.f32.mrb[19].mxu1 }
 0x119   :  { %552 = vst [vmem:[%s1111_s3 + $0x108] sm:$0xff] %v370_v62  ;;  %554 = vst [vmem:[%s1111_s3 + $0x118] sm:$0xff] %v483_v63  ;;  %v374_v6 = vadd.f32 %v373_v4, %v848_v50  ;;  %v487_v7 = vadd.f32 %v486_v5, %v850_v51 }
 0x11a   :  { %555 = vst [vmem:[%s1111_s3 + $0x120] sm:$0xff] %v372_v2  ;;  %557 = vst [vmem:[%s1111_s3 + $0x130] sm:$0xff] %v485_v3 }
 0x11b   :  { %556 = vst [vmem:[%s1111_s3 + $0x128] sm:$0xff] %v374_v6  ;;  %558 = vst [vmem:[%s1111_s3 + $0x138] sm:$0xff] %v487_v7 }
 0x11d   :  { %v377_v8 = vpop.f32.mrb[20].mxu0  ;;  %v490_v9 = vpop.f32.mrb[20].mxu1 }
 0x11e   :  { %v378_v10 = vadd.f32 %v377_v8, %v844_v48  ;;  %v491_v11 = vadd.f32 %v490_v9, %v846_v49  ;;  %v379_v12 = vpop.f32.mrb[21].mxu0  ;;  %v492_v13 = vpop.f32.mrb[21].mxu1 }
 0x11f   :  { %v380_v14 = vadd.f32 %v379_v12, %v848_v50  ;;  %v493_v15 = vadd.f32 %v492_v13, %v850_v51  ;;  %v381_v16 = vpop.f32.mrb[22].mxu0  ;;  %v494_v17 = vpop.f32.mrb[22].mxu1 }
 0x120   :  { %559 = vst [vmem:[%s1111_s3 + $0x140] sm:$0xff] %v378_v10  ;;  %561 = vst [vmem:[%s1111_s3 + $0x150] sm:$0xff] %v491_v11  ;;  %v382_v18 = vadd.f32 %v381_v16, %v844_v48  ;;  %v495_v19 = vadd.f32 %v494_v17, %v846_v49  ;;  %v383_v20 = vpop.f32.mrb[23].mxu0  ;;  %v496_v21 = vpop.f32.mrb[23].mxu1 }
 0x121   :  { %560 = vst [vmem:[%s1111_s3 + $0x148] sm:$0xff] %v380_v14  ;;  %562 = vst [vmem:[%s1111_s3 + $0x158] sm:$0xff] %v493_v15  ;;  %v384_v22 = vadd.f32 %v383_v20, %v848_v50  ;;  %v497_v23 = vadd.f32 %v496_v21, %v850_v51 }
 0x122   :  { %563 = vst [vmem:[%s1111_s3 + $0x160] sm:$0xff] %v382_v18  ;;  %565 = vst [vmem:[%s1111_s3 + $0x170] sm:$0xff] %v495_v19 }
 0x123   :  { %564 = vst [vmem:[%s1111_s3 + $0x168] sm:$0xff] %v384_v22  ;;  %566 = vst [vmem:[%s1111_s3 + $0x178] sm:$0xff] %v497_v23 }
 0x125   :  { %v387_v24 = vpop.f32.mrb[24].mxu0  ;;  %v500_v25 = vpop.f32.mrb[24].mxu1 }
 0x126   :  { %v388_v26 = vadd.f32 %v387_v24, %v844_v48  ;;  %v501_v27 = vadd.f32 %v500_v25, %v846_v49  ;;  %v389_v28 = vpop.f32.mrb[25].mxu0  ;;  %v502_v29 = vpop.f32.mrb[25].mxu1 }
 0x127   :  { %v390_v30 = vadd.f32 %v389_v28, %v848_v50  ;;  %v503_v31 = vadd.f32 %v502_v29, %v850_v51  ;;  %v391_v32 = vpop.f32.mrb[26].mxu0  ;;  %v504_v33 = vpop.f32.mrb[26].mxu1 }
 0x128   :  { %567 = vst [vmem:[%s1111_s3 + $0x180] sm:$0xff] %v388_v26  ;;  %569 = vst [vmem:[%s1111_s3 + $0x190] sm:$0xff] %v501_v27  ;;  %v392_v34 = vadd.f32 %v391_v32, %v844_v48  ;;  %v505_v35 = vadd.f32 %v504_v33, %v846_v49  ;;  %v393_v36 = vpop.f32.mrb[27].mxu0  ;;  %v506_v37 = vpop.f32.mrb[27].mxu1 }
 0x129   :  { %568 = vst [vmem:[%s1111_s3 + $0x188] sm:$0xff] %v390_v30  ;;  %570 = vst [vmem:[%s1111_s3 + $0x198] sm:$0xff] %v503_v31  ;;  %v394_v38 = vadd.f32 %v393_v36, %v848_v50  ;;  %v507_v39 = vadd.f32 %v506_v37, %v850_v51 }
 0x12a   :  { %571 = vst [vmem:[%s1111_s3 + $0x1a0] sm:$0xff] %v392_v34  ;;  %573 = vst [vmem:[%s1111_s3 + $0x1b0] sm:$0xff] %v505_v35 }
 0x12b   :  { %572 = vst [vmem:[%s1111_s3 + $0x1a8] sm:$0xff] %v394_v38  ;;  %574 = vst [vmem:[%s1111_s3 + $0x1b8] sm:$0xff] %v507_v39 }
 0x12d   :  { %v397_v40 = vpop.f32.mrb[28].mxu0  ;;  %v510_v41 = vpop.f32.mrb[28].mxu1 }
 0x12e   :  { %v398_v42 = vadd.f32 %v397_v40, %v844_v48  ;;  %v511_v43 = vadd.f32 %v510_v41, %v846_v49  ;;  %v399_v44 = vpop.f32.mrb[29].mxu0  ;;  %v512_v45 = vpop.f32.mrb[29].mxu1 }
 0x12f   :  { %v400_v46 = vadd.f32 %v399_v44, %v848_v50  ;;  %v513_v47 = vadd.f32 %v512_v45, %v850_v51  ;;  %v401_v52 = vpop.f32.mrb[30].mxu0  ;;  %v514_v53 = vpop.f32.mrb[30].mxu1 }
 0x130   :  { %575 = vst [vmem:[%s1111_s3 + $0x1c0] sm:$0xff] %v398_v42  ;;  %577 = vst [vmem:[%s1111_s3 + $0x1d0] sm:$0xff] %v511_v43  ;;  %v402_v54 = vadd.f32 %v401_v52, %v844_v48  ;;  %v515_v55 = vadd.f32 %v514_v53, %v846_v49  ;;  %v403_v56 = vpop.f32.mrb[31].mxu0  ;;  %v516_v57 = vpop.f32.mrb[31].mxu1 }
 0x131   :  { %576 = vst [vmem:[%s1111_s3 + $0x1c8] sm:$0xff] %v400_v46  ;;  %578 = vst [vmem:[%s1111_s3 + $0x1d8] sm:$0xff] %v513_v47  ;;  %v404_v58 = vadd.f32 %v403_v56, %v848_v50  ;;  %v517_v59 = vadd.f32 %v516_v57, %v850_v51 }
 0x132   :  { %579 = vst [vmem:[%s1111_s3 + $0x1e0] sm:$0xff] %v402_v54  ;;  %581 = vst [vmem:[%s1111_s3 + $0x1f0] sm:$0xff] %v515_v55 }
 0x133   :  { %580 = vst [vmem:[%s1111_s3 + $0x1e8] sm:$0xff] %v404_v58  ;;  %582 = vst [vmem:[%s1111_s3 + $0x1f8] sm:$0xff] %v517_v59 }

// kernel: decoder_rnn_forward.4
= control target key start
LH: loop header
LB: loop body
LE: loop exit
PB: predicated region body
PF: predicated region fallthrough
CT: control target
= control target key end

     0   :  { %v3660_v1 = vmov 0   ;;  %s4566_s1 = inlined_call_operand.vmem [shape: bf16[128,512], index: 1, kind: input, shape index: {}]   ;;  %s4567_s0 = inlined_call_operand.vmem [shape: f32[16,4096], index: 0, kind: input, shape index: {}]   ;;  %s4568_s2 = inlined_call_operand.vmem [shape: bf16[16,1024], index: 2, kind: output, shape index: {}]  }
   0x1   :  { %v3679_v0 = vld [vmem:[%s4566_s1 + $0x4] ss:$16 sps:$4 sm:$0xff]   ;;  %252 = vmatprep.mubr.bf16.mxu0 %v3660_v1  ;;  %295 = vmatprep.mubr.bf16.mxu1 %v3660_v1  ;;  %v3686_v2 = vld [vmem:[%s4566_s1] ss:$16 sps:$4 sm:$0xff]   ;;  %v3709_v6 = vld [vmem:[%s4566_s1 + $0xc] ss:$16 sps:$4 sm:$0xff]  }
   0x2   :  { %220 = vmatprep.subr.bf16.mxu0 %v3679_v0  ;;  %v3692_v3 = vld [vmem:[%s4566_s1 + $0x24] ss:$16 sps:$4 sm:$0xff]   ;;  %v3698_v4 = vld [vmem:[%s4566_s1 + $0x20] ss:$16 sps:$4 sm:$0xff]   ;;  %v3714_v7 = vld [vmem:[%s4566_s1 + $0x8] ss:$16 sps:$4 sm:$0xff]   ;;  %263 = vmatprep.subr.bf16.mxu1 %v3709_v6 }
   0x3   :  { %221 = vmatpush1.bf16.msra.mxu0 %v3686_v2  ;;  %v3704_v5 = vld [vmem:[%s4566_s1 + $0x44] ss:$16 sps:$4 sm:$0xff]   ;;  %v3720_v8 = vld [vmem:[%s4566_s1 + $0x40] ss:$16 sps:$4 sm:$0xff]   ;;  %264 = vmatpush1.bf16.msra.mxu1 %v3714_v7  ;;  %v3733_v10 = vld [vmem:[%s4566_s1 + $0x2c] ss:$16 sps:$4 sm:$0xff]  }
   0x4   :  { %222 = vmatprep.subr.bf16.mxu0 %v3692_v3  ;;  %v3727_v9 = vld [vmem:[%s4566_s1 + $0x64] ss:$16 sps:$4 sm:$0xff]   ;;  %v3738_v11 = vld [vmem:[%s4566_s1 + $0x28] ss:$16 sps:$4 sm:$0xff]   ;;  %265 = vmatprep.subr.bf16.mxu1 %v3733_v10  ;;  %v3745_v12 = vld [vmem:[%s4566_s1 + $0x60] ss:$16 sps:$4 sm:$0xff]  }
   0x5   :  { %v3750_v13 = vld [vmem:[%s4566_s1 + $0x84] ss:$16 sps:$4 sm:$0xff]   ;;  %v3755_v14 = vld [vmem:[%s4566_s1 + $0x4c] ss:$16 sps:$4 sm:$0xff]   ;;  %v3762_v15 = vld [vmem:[%s4566_s1 + $0x48] ss:$16 sps:$4 sm:$0xff]  }
   0x6   :  { %v3768_v16 = vld [vmem:[%s4566_s1 + $0x6c] ss:$16 sps:$4 sm:$0xff]   ;;  %v3774_v17 = vld [vmem:[%s4566_s1 + $0x80] ss:$16 sps:$4 sm:$0xff]   ;;  %v3780_v18 = vld [vmem:[%s4566_s1 + $0xa4] ss:$16 sps:$4 sm:$0xff]  }
   0x7   :  { %223 = vmatpush1.bf16.msra.mxu0 %v3698_v4  ;;  %266 = vmatpush1.bf16.msra.mxu1 %v3738_v11  ;;  %v3786_v19 = vld [vmem:[%s4566_s1 + $0x68] ss:$16 sps:$4 sm:$0xff]   ;;  %v3792_v20 = vld [vmem:[%s4566_s1 + $0x8c] ss:$16 sps:$4 sm:$0xff]   ;;  %v3798_v21 = vld [vmem:[%s4566_s1 + $0xa0] ss:$16 sps:$4 sm:$0xff]  }
   0x8   :  { %224 = vmatprep.subr.bf16.mxu0 %v3704_v5  ;;  %267 = vmatprep.subr.bf16.mxu1 %v3755_v14  ;;  %v3803_v22 = vld [vmem:[%s4566_s1 + $0xc4] ss:$16 sps:$4 sm:$0xff]   ;;  %v3810_v23 = vld [vmem:[%s4566_s1 + $0x88] ss:$16 sps:$4 sm:$0xff]   ;;  %v3815_v24 = vld [vmem:[%s4566_s1 + $0xc0] ss:$16 sps:$4 sm:$0xff]  }
   0x9   :  { %v3821_v25 = vld [vmem:[%s4566_s1 + $0xac] ss:$16 sps:$4 sm:$0xff]   ;;  %v3826_v26 = vld [vmem:[%s4566_s1 + $0xe4] ss:$16 sps:$4 sm:$0xff]   ;;  %v3831_v27 = vld [vmem:[%s4566_s1 + $0xa8] ss:$16 sps:$4 sm:$0xff]  }
   0xa   :  { %v3837_v28 = vld [vmem:[%s4566_s1 + $0xcc] ss:$16 sps:$4 sm:$0xff]   ;;  %v3844_v29 = vld [vmem:[%s4566_s1 + $0xe0] ss:$16 sps:$4 sm:$0xff]   ;;  %v3850_v30 = vld [vmem:[%s4566_s1 + $0xc8] ss:$16 sps:$4 sm:$0xff]  }
   0xb   :  { %225 = vmatpush1.bf16.msra.mxu0 %v3720_v8  ;;  %268 = vmatpush1.bf16.msra.mxu1 %v3762_v15  ;;  %v3856_v31 = vld [vmem:[%s4566_s1 + $0xec] ss:$16 sps:$4 sm:$0xff]   ;;  %v3866_v32 = vld [vmem:[%s4566_s1 + $0xe8] ss:$16 sps:$4 sm:$0xff]   ;;  %v19_v33 = vld [vmem:[%s4567_s0] sm:$0xff] }
   0xc   :  { %226 = vmatprep.subr.bf16.mxu0 %v3727_v9  ;;  %269 = vmatprep.subr.bf16.mxu1 %v3768_v16  ;;  %v20_v34 = vld [vmem:[%s4567_s0 + $0x8] sm:$0xff]  ;;  %v23_v36 = vld [vmem:[%s4567_s0 + $0x100] sm:$0xff]  ;;  %v22_v47 = vld [vmem:[%s4567_s0 + $0x18] sm:$0xff] }
   0xd   :  { %v24_v39 = vld [vmem:[%s4567_s0 + $0x108] sm:$0xff]  ;;  %v26_v52 = vld [vmem:[%s4567_s0 + $0x118] sm:$0xff]  ;;  %v21_v53 = vld [vmem:[%s4567_s0 + $0x10] sm:$0xff] }
   0xe   :  { %v25_v57 = vld [vmem:[%s4567_s0 + $0x110] sm:$0xff] }
   0xf   :  { %227 = vmatpush1.bf16.msra.mxu0 %v3745_v12  ;;  %270 = vmatpush1.bf16.msra.mxu1 %v3786_v19 }
  0x10   :  { %228 = vmatprep.subr.bf16.mxu0 %v3750_v13  ;;  %271 = vmatprep.subr.bf16.mxu1 %v3792_v20 }
  0x13   :  { %229 = vmatpush1.bf16.msra.mxu0 %v3774_v17  ;;  %272 = vmatpush1.bf16.msra.mxu1 %v3810_v23 }
  0x14   :  { %230 = vmatprep.subr.bf16.mxu0 %v3780_v18  ;;  %273 = vmatprep.subr.bf16.mxu1 %v3821_v25 }
  0x17   :  { %231 = vmatpush1.bf16.msra.mxu0 %v3798_v21  ;;  %274 = vmatpush1.bf16.msra.mxu1 %v3831_v27 }
  0x18   :  { %232 = vmatprep.subr.bf16.mxu0 %v3803_v22  ;;  %275 = vmatprep.subr.bf16.mxu1 %v3837_v28 }
  0x1b   :  { %233 = vmatpush1.bf16.msra.mxu0 %v3815_v24  ;;  %276 = vmatpush1.bf16.msra.mxu1 %v3850_v30 }
  0x1c   :  { %234 = vmatprep.subr.bf16.mxu0 %v3826_v26  ;;  %277 = vmatprep.subr.bf16.mxu1 %v3856_v31 }
  0x1f   :  { %235 = vmatpush1.bf16.msra.mxu0 %v3844_v29  ;;  %278 = vmatpush1.bf16.msra.mxu1 %v3866_v32 }
  0x20   :  { %579 = vmatprep.subr.bf16.mxu0 %v3679_v0  ;;  %622 = vmatprep.subr.bf16.mxu1 %v3709_v6 }
  0x22   :  { %253 = vmatmul.mubr.bf16.vlgmr.msra.gmra.mrb[0].mxu0 %v3660_v1  ;;  %296 = vmatmul.mubr.bf16.vlgmr.msra.gmra.mrb[0].mxu1 %v3660_v1 }
  0x23   :  { %580 = vmatpush1.bf16.msra.mxu0 %v3686_v2  ;;  %611 = vmatprep.mubr.bf16.mxu0 %v3660_v1 }
  0x24   :  { %581 = vmatprep.subr.bf16.mxu0 %v3692_v3  ;;  %623 = vmatpush1.bf16.msra.mxu1 %v3714_v7 }
  0x25   :  { %624 = vmatprep.subr.bf16.mxu1 %v3733_v10  ;;  %654 = vmatprep.mubr.bf16.mxu1 %v3660_v1 }
  0x27   :  { %582 = vmatpush1.bf16.msra.mxu0 %v3698_v4 }
  0x28   :  { %583 = vmatprep.subr.bf16.mxu0 %v3704_v5  ;;  %625 = vmatpush1.bf16.msra.mxu1 %v3738_v11 }
  0x29   :  { %626 = vmatprep.subr.bf16.mxu1 %v3755_v14 }
  0x2b   :  { %584 = vmatpush1.bf16.msra.mxu0 %v3720_v8 }
  0x2c   :  { %585 = vmatprep.subr.bf16.mxu0 %v3727_v9  ;;  %627 = vmatpush1.bf16.msra.mxu1 %v3762_v15 }
  0x2d   :  { %628 = vmatprep.subr.bf16.mxu1 %v3768_v16 }
  0x2f   :  { %586 = vmatpush1.bf16.msra.mxu0 %v3745_v12 }
  0x30   :  { %587 = vmatprep.subr.bf16.mxu0 %v3750_v13  ;;  %629 = vmatpush1.bf16.msra.mxu1 %v3786_v19 }
  0x31   :  { %630 = vmatprep.subr.bf16.mxu1 %v3792_v20 }
  0x33   :  { %588 = vmatpush1.bf16.msra.mxu0 %v3774_v17 }
  0x34   :  { %589 = vmatprep.subr.bf16.mxu0 %v3780_v18  ;;  %631 = vmatpush1.bf16.msra.mxu1 %v3810_v23 }
  0x35   :  { %632 = vmatprep.subr.bf16.mxu1 %v3821_v25 }
  0x37   :  { %590 = vmatpush1.bf16.msra.mxu0 %v3798_v21 }
  0x38   :  { %591 = vmatprep.subr.bf16.mxu0 %v3803_v22  ;;  %633 = vmatpush1.bf16.msra.mxu1 %v3831_v27 }
  0x39   :  { %634 = vmatprep.subr.bf16.mxu1 %v3837_v28 }
  0x3b   :  { %592 = vmatpush1.bf16.msra.mxu0 %v3815_v24 }
  0x3c   :  { %593 = vmatprep.subr.bf16.mxu0 %v3826_v26  ;;  %635 = vmatpush1.bf16.msra.mxu1 %v3850_v30 }
  0x3d   :  { %636 = vmatprep.subr.bf16.mxu1 %v3856_v31 }
  0x3f   :  { %594 = vmatpush1.bf16.msra.mxu0 %v3844_v29 }
  0x40   :  { %939 = vmatprep.subr.bf16.mxu0 %v3679_v0  ;;  %637 = vmatpush1.bf16.msra.mxu1 %v3866_v32 }
  0x41   :  { %982 = vmatprep.subr.bf16.mxu1 %v3709_v6 }
  0xf5   :  { %v254_v35 = vpop.f32.mrb[0].mxu0  ;;  %v297_v49 = vpop.f32.mrb[0].mxu1 }
  0xf6   :  { %v306_v37 = vadd.f32 %v254_v35, %v19_v33  ;;  %v256_v38 = vpop.f32.mrb[1].mxu0  ;;  %v299_v51 = vpop.f32.mrb[1].mxu1  ;;  %v308_v59 = vadd.f32 %v297_v49, %v21_v53 }
  0xf7   :  { %v307_v40 = vadd.f32 %v256_v38, %v20_v34  ;;  %v258_v41 = vpop.f32.mrb[2].mxu0  ;;  %v309_v54 = vadd.f32 %v299_v51, %v22_v47  ;;  %v301_v55 = vpop.f32.mrb[2].mxu1 }
  0xf8   :  { %v2933_v42 = vmul.f32 -1.442695, %v306_v37  ;;  %v310_v43 = vadd.f32 %v258_v41, %v23_v36  ;;  %v260_v44 = vpop.f32.mrb[3].mxu0  ;;  %v303_v56 = vpop.f32.mrb[3].mxu1  ;;  %v312_v61 = vadd.f32 %v301_v55, %v25_v57 }
  0xf9   :  { %v2935_v45 = vmul.f32 -1.442695, %v307_v40  ;;  %v311_v46 = vadd.f32 %v260_v44, %v24_v39  ;;  %v313_v58 = vadd.f32 %v303_v56, %v26_v52  ;;  %v2937_v60 = vmul.f32 -1.442695, %v309_v54 }
  0xfa   :  { %3404 = vpow2.f32 %v2933_v42  ;;  %v2934_v48 = vmul.f32 -1.442695, %v310_v43 }
  0xfb   :  { %3406 = vpow2.f32 %v2935_v45  ;;  %v2936_v50 = vmul.f32 -1.442695, %v311_v46  ;;  %v2938_v62 = vmul.f32 -1.442695, %v313_v58 }
  0xfc   :  { %3408 = vpow2.f32 %v2934_v48 }
  0xfd   :  { %3410 = vpow2.f32 %v2936_v50 }
  0xfe   :  { %3412 = vtanh.f32 %v308_v59 }
  0xff   :  { %3414 = vpow2.f32 %v2937_v60 }
 0x100   :  { %3416 = vtanh.f32 %v312_v61 }
 0x101   :  { %3418 = vpow2.f32 %v2938_v62 }
 0x104   :  { %v3405_v63 = vpop.eup %3404 }
 0x105   :  { %v3407_v33 = vpop.eup %3406  ;;  %v320_v34 = vadd.f32 1.0, %v3405_v63 }
 0x106   :  { %v3409_v35 = vpop.eup %3408  ;;  %v332_v36 = vadd.f32 1.0, %v3407_v33 }
 0x107   :  { %v3411_v37 = vpop.eup %3410  ;;  %3420 = vrcp.f32 %v320_v34  ;;  %v321_v38 = vadd.f32 1.0, %v3409_v35  ;;  %v2941_v34 = vld [vmem:[%s4567_s0 + $0x20] sm:$0xff]  ;;  %v2942_v35 = vld [vmem:[%s4567_s0 + $0x28] sm:$0xff] }
 0x108   :  { %3422 = vrcp.f32 %v332_v36  ;;  %v333_v39 = vadd.f32 1.0, %v3411_v37  ;;  %v3413_v40 = vpop.eup %3412 }
 0x109   :  { %3424 = vrcp.f32 %v321_v38  ;;  %v3415_v41 = vpop.eup %3414  ;;  %v2945_v38 = vld [vmem:[%s4567_s0 + $0x120] sm:$0xff] }
 0x10a   :  { %3426 = vrcp.f32 %v333_v39  ;;  %v3417_v42 = vpop.eup %3416  ;;  %v346_v45 = vadd.f32 1.0, %v3415_v41 }
 0x10b   :  { %v3419_v43 = vpop.eup %3418 }
 0x10c   :  { %v347_v52 = vadd.f32 1.0, %v3419_v43  ;;  %3428 = vrcp.f32 %v346_v45 }
 0x111   :  { %v3421_v44 = vpop.eup %3420 }
 0x112   :  { %v3423_v46 = vpop.eup %3422  ;;  %v356_v47 = vmul.f32 %v3421_v44, %v3413_v40 }
 0x113   :  { %v3425_v48 = vpop.eup %3424  ;;  %v354_v49 = vmul.f32 0.0, %v3423_v46 }
 0x114   :  { %v3427_v50 = vpop.eup %3426  ;;  %v357_v51 = vmul.f32 %v3425_v48, %v3417_v42 }
 0x115   :  { %v355_v53 = vmul.f32 0.0, %v3427_v50  ;;  %v3932_v54 = vadd.f32 %v356_v47, %v354_v49  ;;  %v2944_v50 = vld [vmem:[%s4567_s0 + $0x38] sm:$0xff] }
 0x116   :  { %v3429_v56 = vpop.eup %3428 }
 0x117   :  { %3430 = vtanh.f32 %v3932_v54  ;;  %v3935_v55 = vadd.f32 %v357_v51, %v355_v53  ;;  %v2943_v53 = vld [vmem:[%s4567_s0 + $0x30] sm:$0xff] }
 0x118   :  { %3432 = vrcp.f32 %v347_v52 }
 0x119   :  { %3434 = vtanh.f32 %v3935_v55 }
 0x121   :  { %v3431_v57 = vpop.eup %3430 }
 0x122   :  { %v3433_v58 = vpop.eup %3432  ;;  %v362_v59 = vmul.f32 %v3431_v57, %v3429_v56  ;;  %v2948_v57 = vld [vmem:[%s4567_s0 + $0x138] sm:$0xff] }
 0x123   :  { %v3435_v60 = vpop.eup %3434 }
 0x124   :  { %v363_v61 = vmul.f32 %v3435_v60, %v3433_v58  ;;  %v3291_v62 = vpack.c.bf16 %v362_v59, %v362_v59  ;;  %v2947_v58 = vld [vmem:[%s4567_s0 + $0x130] sm:$0xff] }
 0x126   :  { %v366_v63 = vpack.c.bf16 %v363_v61, %v362_v59  ;;  %v3292_v33 = vpack.c.bf16 %v363_v61, %v363_v61  ;;  %375 = vst [vmem:[%s4568_s2] sm:$0xf] %v3291_v62 }
 0x128   :  { %376 = vst [vmem:[%s4568_s2 + $0x20] sm:$0xf] %v3292_v33  ;;  %612 = vmatmul.mubr.bf16.vlgmr.msra.gmra.mrb[4].mxu0 %v366_v63  ;;  %655 = vmatmul.mubr.bf16.vlgmr.msra.gmra.mrb[4].mxu1 %v366_v63 }
 0x129   :  { %940 = vmatpush1.bf16.msra.mxu0 %v3686_v2  ;;  %983 = vmatpush1.bf16.msra.mxu1 %v3714_v7 }
 0x12a   :  { %941 = vmatprep.subr.bf16.mxu0 %v3692_v3  ;;  %984 = vmatprep.subr.bf16.mxu1 %v3733_v10 }
 0x12b   :  { %971 = vmatprep.mubr.bf16.mxu0 %v3660_v1  ;;  %1014 = vmatprep.mubr.bf16.mxu1 %v3660_v1 }
 0x12d   :  { %942 = vmatpush1.bf16.msra.mxu0 %v3698_v4  ;;  %985 = vmatpush1.bf16.msra.mxu1 %v3738_v11 }
 0x12e   :  { %943 = vmatprep.subr.bf16.mxu0 %v3704_v5  ;;  %986 = vmatprep.subr.bf16.mxu1 %v3755_v14 }
 0x131   :  { %944 = vmatpush1.bf16.msra.mxu0 %v3720_v8  ;;  %987 = vmatpush1.bf16.msra.mxu1 %v3762_v15 }
 0x132   :  { %945 = vmatprep.subr.bf16.mxu0 %v3727_v9  ;;  %988 = vmatprep.subr.bf16.mxu1 %v3768_v16 }
 0x135   :  { %946 = vmatpush1.bf16.msra.mxu0 %v3745_v12  ;;  %989 = vmatpush1.bf16.msra.mxu1 %v3786_v19 }
 0x136   :  { %947 = vmatprep.subr.bf16.mxu0 %v3750_v13  ;;  %990 = vmatprep.subr.bf16.mxu1 %v3792_v20 }
 0x139   :  { %948 = vmatpush1.bf16.msra.mxu0 %v3774_v17  ;;  %991 = vmatpush1.bf16.msra.mxu1 %v3810_v23 }
 0x13a   :  { %949 = vmatprep.subr.bf16.mxu0 %v3780_v18  ;;  %992 = vmatprep.subr.bf16.mxu1 %v3821_v25 }
 0x13d   :  { %950 = vmatpush1.bf16.msra.mxu0 %v3798_v21  ;;  %993 = vmatpush1.bf16.msra.mxu1 %v3831_v27 }
 0x13e   :  { %951 = vmatprep.subr.bf16.mxu0 %v3803_v22  ;;  %994 = vmatprep.subr.bf16.mxu1 %v3837_v28 }
 0x141   :  { %952 = vmatpush1.bf16.msra.mxu0 %v3815_v24  ;;  %995 = vmatpush1.bf16.msra.mxu1 %v3850_v30 }
 0x142   :  { %953 = vmatprep.subr.bf16.mxu0 %v3826_v26  ;;  %996 = vmatprep.subr.bf16.mxu1 %v3856_v31 }
 0x145   :  { %954 = vmatpush1.bf16.msra.mxu0 %v3844_v29  ;;  %997 = vmatpush1.bf16.msra.mxu1 %v3866_v32 }
 0x146   :  { %1299 = vmatprep.subr.bf16.mxu0 %v3679_v0  ;;  %1342 = vmatprep.subr.bf16.mxu1 %v3709_v6  ;;  %v2946_v0 = vld [vmem:[%s4567_s0 + $0x128] sm:$0xff] }
 0x1fb   :  { %v613_v36 = vpop.f32.mrb[4].mxu0  ;;  %v656_v37 = vpop.f32.mrb[4].mxu1 }
 0x1fc   :  { %v665_v39 = vadd.f32 %v2941_v34, %v613_v36  ;;  %v615_v40 = vpop.f32.mrb[5].mxu0  ;;  %v658_v41 = vpop.f32.mrb[5].mxu1  ;;  %v667_v59 = vadd.f32 %v2943_v53, %v656_v37 }
 0x1fd   :  { %v666_v6 = vadd.f32 %v2942_v35, %v615_v40  ;;  %v617_v42 = vpop.f32.mrb[6].mxu0  ;;  %v660_v43 = vpop.f32.mrb[6].mxu1  ;;  %v668_v56 = vadd.f32 %v2944_v50, %v658_v41 }
 0x1fe   :  { %v2981_v44 = vmul.f32 -1.442695, %v665_v39  ;;  %v669_v45 = vadd.f32 %v2945_v38, %v617_v42  ;;  %v619_v46 = vpop.f32.mrb[7].mxu0  ;;  %v662_v47 = vpop.f32.mrb[7].mxu1  ;;  %v671_v62 = vadd.f32 %v2947_v58, %v660_v43 }
 0x1ff   :  { %v2983_v48 = vmul.f32 -1.442695, %v666_v6  ;;  %v670_v49 = vadd.f32 %v2946_v0, %v619_v46  ;;  %v2985_v60 = vmul.f32 -1.442695, %v668_v56  ;;  %v672_v61 = vadd.f32 %v2948_v57, %v662_v47 }
 0x200   :  { %3436 = vpow2.f32 %v2981_v44  ;;  %v2982_v51 = vmul.f32 -1.442695, %v669_v45 }
 0x201   :  { %3438 = vpow2.f32 %v2983_v48  ;;  %v2984_v52 = vmul.f32 -1.442695, %v670_v49  ;;  %v2986_v35 = vmul.f32 -1.442695, %v672_v61 }
 0x202   :  { %3440 = vpow2.f32 %v2982_v51 }
 0x203   :  { %3442 = vpow2.f32 %v2984_v52 }
 0x204   :  { %3444 = vtanh.f32 %v667_v59 }
 0x205   :  { %3446 = vpow2.f32 %v2985_v60 }
 0x206   :  { %3448 = vtanh.f32 %v671_v62 }
 0x20a   :  { %v3437_v63 = vpop.eup %3436 }
 0x20b   :  { %v3439_v33 = vpop.eup %3438  ;;  %v679_v34 = vadd.f32 1.0, %v3437_v63 }
 0x20c   :  { %v691_v36 = vadd.f32 1.0, %v3439_v33  ;;  %v3441_v38 = vpop.eup %3440 }
 0x20d   :  { %3450 = vrcp.f32 %v679_v34  ;;  %v680_v39 = vadd.f32 1.0, %v3441_v38  ;;  %v3443_v40 = vpop.eup %3442 }
 0x20e   :  { %3452 = vrcp.f32 %v691_v36  ;;  %v692_v41 = vadd.f32 1.0, %v3443_v40  ;;  %v3445_v37 = vpop.eup %3444 }
 0x20f   :  { %3454 = vpow2.f32 %v2986_v35  ;;  %v3447_v0 = vpop.eup %3446 }
 0x210   :  { %3456 = vrcp.f32 %v680_v39  ;;  %v3449_v6 = vpop.eup %3448  ;;  %v705_v45 = vadd.f32 1.0, %v3447_v0 }
 0x211   :  { %3458 = vrcp.f32 %v692_v41 }
 0x212   :  { %3460 = vrcp.f32 %v705_v45 }
 0x217   :  { %v3451_v42 = vpop.eup %3450 }
 0x218   :  { %v3453_v43 = vpop.eup %3452  ;;  %v715_v44 = vmul.f32 %v3451_v42, %v3445_v37 }
 0x219   :  { %v3455_v46 = vpop.eup %3454  ;;  %v713_v47 = vmul.f32 %v3453_v43, %v3932_v54 }
 0x21a   :  { %v3457_v48 = vpop.eup %3456  ;;  %v706_v52 = vadd.f32 1.0, %v3455_v46 }
 0x21b   :  { %v4003_v49 = vadd.f32 %v715_v44, %v713_v47  ;;  %v716_v50 = vmul.f32 %v3457_v48, %v3449_v6  ;;  %v3459_v51 = vpop.eup %3458 }
 0x21c   :  { %v714_v53 = vmul.f32 %v3459_v51, %v3935_v55  ;;  %v3461_v57 = vpop.eup %3460 }
 0x21d   :  { %3462 = vtanh.f32 %v4003_v49 }
 0x21e   :  { %v4007_v56 = vadd.f32 %v716_v50, %v714_v53  ;;  %3464 = vrcp.f32 %v706_v52 }
 0x220   :  { %3466 = vtanh.f32 %v4007_v56 }
 0x227   :  { %v3463_v58 = vpop.eup %3462 }
 0x228   :  { %v721_v59 = vmul.f32 %v3463_v58, %v3461_v57  ;;  %v3465_v54 = vpop.eup %3464 }
 0x22a   :  { %v3293_v60 = vpack.c.bf16 %v721_v59, %v721_v59  ;;  %v3467_v61 = vpop.eup %3466 }
 0x22b   :  { %v722_v62 = vmul.f32 %v3467_v61, %v3465_v54 }
 0x22c   :  { %2989 = vst [vmem:[%s4568_s2 + $0x4] sm:$0xf] %v3293_v60 }
 0x22d   :  { %v725_v63 = vpack.c.bf16 %v722_v62, %v721_v59  ;;  %v3294_v33 = vpack.c.bf16 %v722_v62, %v722_v62 }
 0x22f   :  { %2990 = vst [vmem:[%s4568_s2 + $0x24] sm:$0xf] %v3294_v33  ;;  %972 = vmatmul.mubr.bf16.vlgmr.msra.gmra.mrb[8].mxu0 %v725_v63  ;;  %1015 = vmatmul.mubr.bf16.vlgmr.msra.gmra.mrb[8].mxu1 %v725_v63 }
 0x230   :  { %1300 = vmatpush1.bf16.msra.mxu0 %v3686_v2  ;;  %1343 = vmatpush1.bf16.msra.mxu1 %v3714_v7  ;;  %v2991_v2 = vld [vmem:[%s4567_s0 + $0x40] sm:$0xff] }
 0x231   :  { %1301 = vmatprep.subr.bf16.mxu0 %v3692_v3  ;;  %1344 = vmatprep.subr.bf16.mxu1 %v3733_v10  ;;  %v2992_v3 = vld [vmem:[%s4567_s0 + $0x48] sm:$0xff]  ;;  %v2995_v7 = vld [vmem:[%s4567_s0 + $0x140] sm:$0xff] }
 0x232   :  { %1331 = vmatprep.mubr.bf16.mxu0 %v3660_v1  ;;  %1374 = vmatprep.mubr.bf16.mxu1 %v3660_v1 }
 0x234   :  { %1302 = vmatpush1.bf16.msra.mxu0 %v3698_v4  ;;  %1345 = vmatpush1.bf16.msra.mxu1 %v3738_v11  ;;  %v2996_v11 = vld [vmem:[%s4567_s0 + $0x148] sm:$0xff] }
 0x235   :  { %1303 = vmatprep.subr.bf16.mxu0 %v3704_v5  ;;  %1346 = vmatprep.subr.bf16.mxu1 %v3755_v14 }
 0x238   :  { %1304 = vmatpush1.bf16.msra.mxu0 %v3720_v8  ;;  %1347 = vmatpush1.bf16.msra.mxu1 %v3762_v15 }
 0x239   :  { %1305 = vmatprep.subr.bf16.mxu0 %v3727_v9  ;;  %1348 = vmatprep.subr.bf16.mxu1 %v3768_v16 }
 0x23c   :  { %1306 = vmatpush1.bf16.msra.mxu0 %v3745_v12  ;;  %1349 = vmatpush1.bf16.msra.mxu1 %v3786_v19 }
 0x23d   :  { %1307 = vmatprep.subr.bf16.mxu0 %v3750_v13  ;;  %1350 = vmatprep.subr.bf16.mxu1 %v3792_v20 }
 0x240   :  { %1308 = vmatpush1.bf16.msra.mxu0 %v3774_v17  ;;  %1351 = vmatpush1.bf16.msra.mxu1 %v3810_v23 }
 0x241   :  { %1309 = vmatprep.subr.bf16.mxu0 %v3780_v18  ;;  %1352 = vmatprep.subr.bf16.mxu1 %v3821_v25 }
 0x244   :  { %1310 = vmatpush1.bf16.msra.mxu0 %v3798_v21  ;;  %1353 = vmatpush1.bf16.msra.mxu1 %v3831_v27  ;;  %v2994_v21 = vld [vmem:[%s4567_s0 + $0x58] sm:$0xff]  ;;  %v2997_v27 = vld [vmem:[%s4567_s0 + $0x150] sm:$0xff] }
 0x245   :  { %1311 = vmatprep.subr.bf16.mxu0 %v3803_v22  ;;  %1354 = vmatprep.subr.bf16.mxu1 %v3837_v28 }
 0x248   :  { %1312 = vmatpush1.bf16.msra.mxu0 %v3815_v24  ;;  %1355 = vmatpush1.bf16.msra.mxu1 %v3850_v30  ;;  %v2993_v24 = vld [vmem:[%s4567_s0 + $0x50] sm:$0xff] }
 0x249   :  { %1313 = vmatprep.subr.bf16.mxu0 %v3826_v26  ;;  %1356 = vmatprep.subr.bf16.mxu1 %v3856_v31  ;;  %v2998_v26 = vld [vmem:[%s4567_s0 + $0x158] sm:$0xff] }
 0x24c   :  { %1314 = vmatpush1.bf16.msra.mxu0 %v3844_v29  ;;  %1357 = vmatpush1.bf16.msra.mxu1 %v3866_v32 }
 0x302   :  { %v973_v4 = vpop.f32.mrb[8].mxu0  ;;  %v1016_v5 = vpop.f32.mrb[8].mxu1 }
 0x303   :  { %v1025_v8 = vadd.f32 %v2991_v2, %v973_v4  ;;  %v975_v9 = vpop.f32.mrb[9].mxu0  ;;  %v1018_v10 = vpop.f32.mrb[9].mxu1  ;;  %v1027_v28 = vadd.f32 %v2993_v24, %v1016_v5  ;;  %v4101_v4 = vld [vmem:[%s4566_s1] ss:$16 sps:$4 sm:$0xff]   ;;  %v4106_v5 = vld [vmem:[%s4566_s1 + $0x8] ss:$16 sps:$4 sm:$0xff]  }
 0x304   :  { %v1026_v12 = vadd.f32 %v2992_v3, %v975_v9  ;;  %v977_v13 = vpop.f32.mrb[10].mxu0  ;;  %v1020_v14 = vpop.f32.mrb[10].mxu1  ;;  %v1028_v25 = vadd.f32 %v2994_v21, %v1018_v10  ;;  %v4096_v3 = vld [vmem:[%s4566_s1 + $0xc] ss:$16 sps:$4 sm:$0xff]   ;;  %v4125_v9 = vld [vmem:[%s4566_s1 + $0x20] ss:$16 sps:$4 sm:$0xff]  }
 0x305   :  { %v3031_v15 = vmul.f32 -1.442695, %v1025_v8  ;;  %v1029_v16 = vadd.f32 %v2995_v7, %v977_v13  ;;  %v979_v17 = vpop.f32.mrb[11].mxu0  ;;  %v1022_v18 = vpop.f32.mrb[11].mxu1  ;;  %v1031_v31 = vadd.f32 %v2997_v27, %v1020_v14  ;;  %1702 = vmatprep.subr.bf16.mxu1 %v4096_v3  ;;  %v4115_v7 = vld [vmem:[%s4566_s1 + $0x24] ss:$16 sps:$4 sm:$0xff]  }
 0x306   :  { %v3033_v19 = vmul.f32 -1.442695, %v1026_v12  ;;  %v1030_v20 = vadd.f32 %v2996_v11, %v979_v17  ;;  %v3035_v29 = vmul.f32 -1.442695, %v1028_v25  ;;  %v1032_v30 = vadd.f32 %v2998_v26, %v1022_v18  ;;  %v4120_v8 = vld [vmem:[%s4566_s1 + $0x2c] ss:$16 sps:$4 sm:$0xff]  }
 0x307   :  { %3468 = vpow2.f32 %v3031_v15  ;;  %v3032_v22 = vmul.f32 -1.442695, %v1029_v16  ;;  %v4130_v10 = vld [vmem:[%s4566_s1 + $0x28] ss:$16 sps:$4 sm:$0xff]   ;;  %v4139_v11 = vld [vmem:[%s4566_s1 + $0x44] ss:$16 sps:$4 sm:$0xff]  }
 0x308   :  { %3470 = vpow2.f32 %v3033_v19  ;;  %v3034_v23 = vmul.f32 -1.442695, %v1030_v20  ;;  %v3036_v35 = vmul.f32 -1.442695, %v1032_v30  ;;  %v4144_v12 = vld [vmem:[%s4566_s1 + $0x4c] ss:$16 sps:$4 sm:$0xff]  }
 0x309   :  { %3472 = vpow2.f32 %v3032_v22  ;;  %v4149_v13 = vld [vmem:[%s4566_s1 + $0x40] ss:$16 sps:$4 sm:$0xff]   ;;  %v4154_v14 = vld [vmem:[%s4566_s1 + $0x48] ss:$16 sps:$4 sm:$0xff]   ;;  %v4163_v15 = vld [vmem:[%s4566_s1 + $0x64] ss:$16 sps:$4 sm:$0xff]  }
 0x30a   :  { %3474 = vpow2.f32 %v3034_v23  ;;  %v4168_v16 = vld [vmem:[%s4566_s1 + $0x6c] ss:$16 sps:$4 sm:$0xff]   ;;  %v4173_v17 = vld [vmem:[%s4566_s1 + $0x60] ss:$16 sps:$4 sm:$0xff]   ;;  %v4178_v18 = vld [vmem:[%s4566_s1 + $0x68] ss:$16 sps:$4 sm:$0xff]  }
 0x30b   :  { %3476 = vtanh.f32 %v1027_v28  ;;  %v4187_v19 = vld [vmem:[%s4566_s1 + $0x84] ss:$16 sps:$4 sm:$0xff]   ;;  %v4192_v20 = vld [vmem:[%s4566_s1 + $0x8c] ss:$16 sps:$4 sm:$0xff]   ;;  %v4197_v21 = vld [vmem:[%s4566_s1 + $0x80] ss:$16 sps:$4 sm:$0xff]  }
 0x30c   :  { %3478 = vpow2.f32 %v3035_v29  ;;  %v4202_v22 = vld [vmem:[%s4566_s1 + $0x88] ss:$16 sps:$4 sm:$0xff]   ;;  %v4209_v23 = vld [vmem:[%s4566_s1 + $0xa4] ss:$16 sps:$4 sm:$0xff]   ;;  %v4214_v24 = vld [vmem:[%s4566_s1 + $0xac] ss:$16 sps:$4 sm:$0xff]  }
 0x30d   :  { %3480 = vtanh.f32 %v1031_v31  ;;  %v4221_v25 = vld [vmem:[%s4566_s1 + $0xa0] ss:$16 sps:$4 sm:$0xff]   ;;  %v4226_v26 = vld [vmem:[%s4566_s1 + $0xa8] ss:$16 sps:$4 sm:$0xff]   ;;  %v4233_v27 = vld [vmem:[%s4566_s1 + $0xc4] ss:$16 sps:$4 sm:$0xff]  }
 0x30e   :  { %v4238_v28 = vld [vmem:[%s4566_s1 + $0xcc] ss:$16 sps:$4 sm:$0xff]   ;;  %v4245_v29 = vld [vmem:[%s4566_s1 + $0xc0] ss:$16 sps:$4 sm:$0xff]   ;;  %v4250_v30 = vld [vmem:[%s4566_s1 + $0xc8] ss:$16 sps:$4 sm:$0xff]  }
 0x30f   :  { %v4257_v31 = vld [vmem:[%s4566_s1 + $0xe4] ss:$16 sps:$4 sm:$0xff]  }
 0x311   :  { %v3469_v32 = vpop.eup %3468 }
 0x312   :  { %v3471_v55 = vpop.eup %3470  ;;  %v1039_v34 = vadd.f32 1.0, %v3469_v32  ;;  %v4262_v32 = vld [vmem:[%s4566_s1 + $0xec] ss:$16 sps:$4 sm:$0xff]  }
 0x313   :  { %v1051_v36 = vadd.f32 1.0, %v3471_v55  ;;  %v3473_v38 = vpop.eup %3472  ;;  %v4269_v55 = vld [vmem:[%s4566_s1 + $0xe0] ss:$16 sps:$4 sm:$0xff]  }
 0x314   :  { %3482 = vrcp.f32 %v1039_v34  ;;  %v1040_v39 = vadd.f32 1.0, %v3473_v38  ;;  %v3475_v40 = vpop.eup %3474  ;;  %v4274_v34 = vld [vmem:[%s4566_s1 + $0xe8] ss:$16 sps:$4 sm:$0xff]  }
 0x315   :  { %3484 = vrcp.f32 %v1051_v36  ;;  %v1052_v41 = vadd.f32 1.0, %v3475_v40  ;;  %v3477_v37 = vpop.eup %3476  ;;  %v3042_v36 = vld [vmem:[%s4567_s0 + $0x68] sm:$0xff]  ;;  %v3045_v40 = vld [vmem:[%s4567_s0 + $0x160] sm:$0xff] }
 0x316   :  { %3486 = vpow2.f32 %v3036_v35  ;;  %v3479_v0 = vpop.eup %3478  ;;  %v3041_v35 = vld [vmem:[%s4567_s0 + $0x60] sm:$0xff] }
 0x317   :  { %3488 = vrcp.f32 %v1040_v39  ;;  %v3481_v6 = vpop.eup %3480  ;;  %v1065_v45 = vadd.f32 1.0, %v3479_v0 }
 0x318   :  { %3490 = vrcp.f32 %v1052_v41 }
 0x319   :  { %3492 = vrcp.f32 %v1065_v45 }
 0x31e   :  { %v3483_v42 = vpop.eup %3482 }
 0x31f   :  { %v3485_v43 = vpop.eup %3484  ;;  %v1075_v44 = vmul.f32 %v3483_v42, %v3477_v37 }
 0x320   :  { %v3487_v46 = vpop.eup %3486  ;;  %v1073_v47 = vmul.f32 %v3485_v43, %v4003_v49 }
 0x321   :  { %v3489_v48 = vpop.eup %3488  ;;  %v1066_v53 = vadd.f32 1.0, %v3487_v46 }
 0x322   :  { %v4073_v50 = vadd.f32 %v1075_v44, %v1073_v47  ;;  %v1076_v51 = vmul.f32 %v3489_v48, %v3481_v6  ;;  %v3491_v52 = vpop.eup %3490  ;;  %v3046_v6 = vld [vmem:[%s4567_s0 + $0x168] sm:$0xff] }
 0x323   :  { %v1074_v57 = vmul.f32 %v3491_v52, %v4007_v56  ;;  %v3493_v59 = vpop.eup %3492  ;;  %v4091_v56 = vld [vmem:[%s4566_s1 + $0x4] ss:$16 sps:$4 sm:$0xff]  }
 0x324   :  { %3494 = vtanh.f32 %v4073_v50  ;;  %1659 = vmatprep.subr.bf16.mxu0 %v4091_v56 }
 0x325   :  { %v4077_v58 = vadd.f32 %v1076_v51, %v1074_v57  ;;  %3496 = vrcp.f32 %v1066_v53  ;;  %v3044_v53 = vld [vmem:[%s4567_s0 + $0x78] sm:$0xff] }
 0x327   :  { %3498 = vtanh.f32 %v4077_v58 }
 0x32e   :  { %v3495_v54 = vpop.eup %3494 }
 0x32f   :  { %v1081_v60 = vmul.f32 %v3495_v54, %v3493_v59  ;;  %v3497_v49 = vpop.eup %3496  ;;  %v3043_v54 = vld [vmem:[%s4567_s0 + $0x70] sm:$0xff] }
 0x331   :  { %v3295_v61 = vpack.c.bf16 %v1081_v60, %v1081_v60  ;;  %v3499_v62 = vpop.eup %3498 }
 0x332   :  { %v1082_v63 = vmul.f32 %v3499_v62, %v3497_v49  ;;  %v3048_v49 = vld [vmem:[%s4567_s0 + $0x178] sm:$0xff] }
 0x333   :  { %3039 = vst [vmem:[%s4568_s2 + $0x8] sm:$0xf] %v3295_v61  ;;  %v3047_v61 = vld [vmem:[%s4567_s0 + $0x170] sm:$0xff] }
 0x334   :  { %v1085_v33 = vpack.c.bf16 %v1082_v63, %v1081_v60  ;;  %v3296_v2 = vpack.c.bf16 %v1082_v63, %v1082_v63 }
 0x336   :  { %3040 = vst [vmem:[%s4568_s2 + $0x28] sm:$0xf] %v3296_v2  ;;  %1332 = vmatmul.mubr.bf16.vlgmr.msra.gmra.mrb[12].mxu0 %v1085_v33  ;;  %1375 = vmatmul.mubr.bf16.vlgmr.msra.gmra.mrb[12].mxu1 %v1085_v33 }
 0x337   :  { %1691 = vmatprep.mubr.bf16.mxu0 %v3660_v1  ;;  %1734 = vmatprep.mubr.bf16.mxu1 %v3660_v1 }
 0x338   :  { %1660 = vmatpush1.bf16.msra.mxu0 %v4101_v4  ;;  %1703 = vmatpush1.bf16.msra.mxu1 %v4106_v5 }
 0x339   :  { %1661 = vmatprep.subr.bf16.mxu0 %v4115_v7  ;;  %1704 = vmatprep.subr.bf16.mxu1 %v4120_v8 }
 0x33c   :  { %1662 = vmatpush1.bf16.msra.mxu0 %v4125_v9  ;;  %1705 = vmatpush1.bf16.msra.mxu1 %v4130_v10 }
 0x33d   :  { %1663 = vmatprep.subr.bf16.mxu0 %v4139_v11  ;;  %1706 = vmatprep.subr.bf16.mxu1 %v4144_v12 }
 0x340   :  { %1664 = vmatpush1.bf16.msra.mxu0 %v4149_v13  ;;  %1707 = vmatpush1.bf16.msra.mxu1 %v4154_v14 }
 0x341   :  { %1665 = vmatprep.subr.bf16.mxu0 %v4163_v15  ;;  %1708 = vmatprep.subr.bf16.mxu1 %v4168_v16 }
 0x344   :  { %1666 = vmatpush1.bf16.msra.mxu0 %v4173_v17  ;;  %1709 = vmatpush1.bf16.msra.mxu1 %v4178_v18 }
 0x345   :  { %1667 = vmatprep.subr.bf16.mxu0 %v4187_v19  ;;  %1710 = vmatprep.subr.bf16.mxu1 %v4192_v20 }
 0x348   :  { %1668 = vmatpush1.bf16.msra.mxu0 %v4197_v21  ;;  %1711 = vmatpush1.bf16.msra.mxu1 %v4202_v22 }
 0x349   :  { %1669 = vmatprep.subr.bf16.mxu0 %v4209_v23  ;;  %1712 = vmatprep.subr.bf16.mxu1 %v4214_v24 }
 0x34c   :  { %1670 = vmatpush1.bf16.msra.mxu0 %v4221_v25  ;;  %1713 = vmatpush1.bf16.msra.mxu1 %v4226_v26 }
 0x34d   :  { %1671 = vmatprep.subr.bf16.mxu0 %v4233_v27  ;;  %1714 = vmatprep.subr.bf16.mxu1 %v4238_v28 }
 0x350   :  { %1672 = vmatpush1.bf16.msra.mxu0 %v4245_v29  ;;  %1715 = vmatpush1.bf16.msra.mxu1 %v4250_v30 }
 0x351   :  { %1673 = vmatprep.subr.bf16.mxu0 %v4257_v31  ;;  %1716 = vmatprep.subr.bf16.mxu1 %v4262_v32 }
 0x354   :  { %1674 = vmatpush1.bf16.msra.mxu0 %v4269_v55  ;;  %1717 = vmatpush1.bf16.msra.mxu1 %v4274_v34 }
 0x355   :  { %2019 = vmatprep.subr.bf16.mxu0 %v4091_v56  ;;  %2062 = vmatprep.subr.bf16.mxu1 %v4096_v3 }
 0x409   :  { %v1333_v38 = vpop.f32.mrb[12].mxu0  ;;  %v1376_v39 = vpop.f32.mrb[12].mxu1 }
 0x40a   :  { %v1385_v41 = vadd.f32 %v3041_v35, %v1333_v38  ;;  %v1335_v37 = vpop.f32.mrb[13].mxu0  ;;  %v1378_v0 = vpop.f32.mrb[13].mxu1  ;;  %v1387_v62 = vadd.f32 %v3043_v54, %v1376_v39 }
 0x40b   :  { %v1386_v42 = vadd.f32 %v3042_v36, %v1335_v37  ;;  %v1337_v43 = vpop.f32.mrb[14].mxu0  ;;  %v1380_v44 = vpop.f32.mrb[14].mxu1  ;;  %v1388_v60 = vadd.f32 %v3044_v53, %v1378_v0 }
 0x40c   :  { %v3081_v45 = vmul.f32 -1.442695, %v1385_v41  ;;  %v1389_v46 = vadd.f32 %v3045_v40, %v1337_v43  ;;  %v1339_v47 = vpop.f32.mrb[15].mxu0  ;;  %v1382_v48 = vpop.f32.mrb[15].mxu1  ;;  %v1391_v2 = vadd.f32 %v3047_v61, %v1380_v44 }
 0x40d   :  { %v3083_v51 = vmul.f32 -1.442695, %v1386_v42  ;;  %v1390_v52 = vadd.f32 %v3046_v6, %v1339_v47  ;;  %v3085_v63 = vmul.f32 -1.442695, %v1388_v60  ;;  %v1392_v33 = vadd.f32 %v3048_v49, %v1382_v48 }
 0x40e   :  { %3500 = vpow2.f32 %v3081_v45  ;;  %v3082_v57 = vmul.f32 -1.442695, %v1389_v46 }
 0x40f   :  { %3502 = vpow2.f32 %v3083_v51  ;;  %v3084_v59 = vmul.f32 -1.442695, %v1390_v52  ;;  %v3086_v40 = vmul.f32 -1.442695, %v1392_v33 }
 0x410   :  { %3504 = vpow2.f32 %v3082_v57 }
 0x411   :  { %3506 = vpow2.f32 %v3084_v59 }
 0x412   :  { %3508 = vtanh.f32 %v1387_v62 }
 0x413   :  { %3510 = vpow2.f32 %v3085_v63 }
 0x414   :  { %3512 = vtanh.f32 %v1391_v2 }
 0x418   :  { %v3501_v35 = vpop.eup %3500 }
 0x419   :  { %v3503_v36 = vpop.eup %3502  ;;  %v1399_v38 = vadd.f32 1.0, %v3501_v35 }
 0x41a   :  { %v1411_v41 = vadd.f32 1.0, %v3503_v36  ;;  %v3505_v37 = vpop.eup %3504 }
 0x41b   :  { %3514 = vrcp.f32 %v1399_v38  ;;  %v1400_v0 = vadd.f32 1.0, %v3505_v37  ;;  %v3507_v6 = vpop.eup %3506 }
 0x41c   :  { %3516 = vrcp.f32 %v1411_v41  ;;  %v1412_v42 = vadd.f32 1.0, %v3507_v6  ;;  %v3509_v39 = vpop.eup %3508  ;;  %v3092_v41 = vld [vmem:[%s4567_s0 + $0x88] sm:$0xff]  ;;  %v3095_v6 = vld [vmem:[%s4567_s0 + $0x180] sm:$0xff] }
 0x41d   :  { %3518 = vpow2.f32 %v3086_v40  ;;  %v3511_v43 = vpop.eup %3510 }
 0x41e   :  { %3520 = vrcp.f32 %v1400_v0  ;;  %v3513_v44 = vpop.eup %3512  ;;  %v1425_v48 = vadd.f32 1.0, %v3511_v43 }
 0x41f   :  { %3522 = vrcp.f32 %v1412_v42 }
 0x420   :  { %3524 = vrcp.f32 %v1425_v48 }
 0x425   :  { %v3515_v45 = vpop.eup %3514 }
 0x426   :  { %v3517_v46 = vpop.eup %3516  ;;  %v1435_v47 = vmul.f32 %v3515_v45, %v3509_v39 }
 0x427   :  { %v3519_v51 = vpop.eup %3518  ;;  %v1433_v52 = vmul.f32 %v3517_v46, %v4073_v50 }
 0x428   :  { %v3521_v53 = vpop.eup %3520  ;;  %v1426_v60 = vadd.f32 1.0, %v3519_v51 }
 0x429   :  { %v4307_v57 = vadd.f32 %v1435_v47, %v1433_v52  ;;  %v1436_v59 = vmul.f32 %v3521_v53, %v3513_v44  ;;  %v3523_v54 = vpop.eup %3522  ;;  %v3096_v44 = vld [vmem:[%s4567_s0 + $0x188] sm:$0xff] }
 0x42a   :  { %v1434_v49 = vmul.f32 %v3523_v54, %v4077_v58  ;;  %v3525_v62 = vpop.eup %3524  ;;  %v3091_v58 = vld [vmem:[%s4567_s0 + $0x80] sm:$0xff] }
 0x42b   :  { %3526 = vtanh.f32 %v4307_v57 }
 0x42c   :  { %v4311_v61 = vadd.f32 %v1436_v59, %v1434_v49  ;;  %3528 = vrcp.f32 %v1426_v60  ;;  %v3094_v60 = vld [vmem:[%s4567_s0 + $0x98] sm:$0xff] }
 0x42e   :  { %3530 = vtanh.f32 %v4311_v61 }
 0x435   :  { %v3527_v63 = vpop.eup %3526 }
 0x436   :  { %v1441_v33 = vmul.f32 %v3527_v63, %v3525_v62  ;;  %v3529_v50 = vpop.eup %3528  ;;  %v3093_v63 = vld [vmem:[%s4567_s0 + $0x90] sm:$0xff] }
 0x438   :  { %v3297_v2 = vpack.c.bf16 %v1441_v33, %v1441_v33  ;;  %v3531_v35 = vpop.eup %3530 }
 0x439   :  { %v1442_v36 = vmul.f32 %v3531_v35, %v3529_v50  ;;  %v3098_v50 = vld [vmem:[%s4567_s0 + $0x198] sm:$0xff] }
 0x43a   :  { %3089 = vst [vmem:[%s4568_s2 + $0xc] sm:$0xf] %v3297_v2  ;;  %v3097_v2 = vld [vmem:[%s4567_s0 + $0x190] sm:$0xff] }
 0x43b   :  { %v1445_v38 = vpack.c.bf16 %v1442_v36, %v1441_v33  ;;  %v3298_v40 = vpack.c.bf16 %v1442_v36, %v1442_v36 }
 0x43d   :  { %3090 = vst [vmem:[%s4568_s2 + $0x2c] sm:$0xf] %v3298_v40  ;;  %1692 = vmatmul.mubr.bf16.vlgmr.msra.gmra.mrb[16].mxu0 %v1445_v38  ;;  %1735 = vmatmul.mubr.bf16.vlgmr.msra.gmra.mrb[16].mxu1 %v1445_v38 }
 0x43e   :  { %2020 = vmatpush1.bf16.msra.mxu0 %v4101_v4  ;;  %2063 = vmatpush1.bf16.msra.mxu1 %v4106_v5 }
 0x43f   :  { %2021 = vmatprep.subr.bf16.mxu0 %v4115_v7  ;;  %2064 = vmatprep.subr.bf16.mxu1 %v4120_v8 }
 0x440   :  { %2051 = vmatprep.mubr.bf16.mxu0 %v3660_v1  ;;  %2094 = vmatprep.mubr.bf16.mxu1 %v3660_v1 }
 0x442   :  { %2022 = vmatpush1.bf16.msra.mxu0 %v4125_v9  ;;  %2065 = vmatpush1.bf16.msra.mxu1 %v4130_v10 }
 0x443   :  { %2023 = vmatprep.subr.bf16.mxu0 %v4139_v11  ;;  %2066 = vmatprep.subr.bf16.mxu1 %v4144_v12 }
 0x446   :  { %2024 = vmatpush1.bf16.msra.mxu0 %v4149_v13  ;;  %2067 = vmatpush1.bf16.msra.mxu1 %v4154_v14 }
 0x447   :  { %2025 = vmatprep.subr.bf16.mxu0 %v4163_v15  ;;  %2068 = vmatprep.subr.bf16.mxu1 %v4168_v16 }
 0x44a   :  { %2026 = vmatpush1.bf16.msra.mxu0 %v4173_v17  ;;  %2069 = vmatpush1.bf16.msra.mxu1 %v4178_v18 }
 0x44b   :  { %2027 = vmatprep.subr.bf16.mxu0 %v4187_v19  ;;  %2070 = vmatprep.subr.bf16.mxu1 %v4192_v20 }
 0x44e   :  { %2028 = vmatpush1.bf16.msra.mxu0 %v4197_v21  ;;  %2071 = vmatpush1.bf16.msra.mxu1 %v4202_v22 }
 0x44f   :  { %2029 = vmatprep.subr.bf16.mxu0 %v4209_v23  ;;  %2072 = vmatprep.subr.bf16.mxu1 %v4214_v24 }
 0x452   :  { %2030 = vmatpush1.bf16.msra.mxu0 %v4221_v25  ;;  %2073 = vmatpush1.bf16.msra.mxu1 %v4226_v26 }
 0x453   :  { %2031 = vmatprep.subr.bf16.mxu0 %v4233_v27  ;;  %2074 = vmatprep.subr.bf16.mxu1 %v4238_v28 }
 0x456   :  { %2032 = vmatpush1.bf16.msra.mxu0 %v4245_v29  ;;  %2075 = vmatpush1.bf16.msra.mxu1 %v4250_v30 }
 0x457   :  { %2033 = vmatprep.subr.bf16.mxu0 %v4257_v31  ;;  %2076 = vmatprep.subr.bf16.mxu1 %v4262_v32 }
 0x45a   :  { %2034 = vmatpush1.bf16.msra.mxu0 %v4269_v55  ;;  %2077 = vmatpush1.bf16.msra.mxu1 %v4274_v34 }
 0x45b   :  { %2379 = vmatprep.subr.bf16.mxu0 %v4091_v56  ;;  %2422 = vmatprep.subr.bf16.mxu1 %v4096_v3 }
 0x510   :  { %v1693_v37 = vpop.f32.mrb[16].mxu0  ;;  %v1736_v0 = vpop.f32.mrb[16].mxu1 }
 0x511   :  { %v1745_v42 = vadd.f32 %v3091_v58, %v1693_v37  ;;  %v1695_v39 = vpop.f32.mrb[17].mxu0  ;;  %v1738_v43 = vpop.f32.mrb[17].mxu1  ;;  %v1747_v35 = vadd.f32 %v3093_v63, %v1736_v0 }
 0x512   :  { %v1746_v45 = vadd.f32 %v3092_v41, %v1695_v39  ;;  %v1697_v46 = vpop.f32.mrb[18].mxu0  ;;  %v1740_v47 = vpop.f32.mrb[18].mxu1  ;;  %v1748_v33 = vadd.f32 %v3094_v60, %v1738_v43 }
 0x513   :  { %v3131_v48 = vmul.f32 -1.442695, %v1745_v42  ;;  %v1749_v51 = vadd.f32 %v3095_v6, %v1697_v46  ;;  %v1699_v52 = vpop.f32.mrb[19].mxu0  ;;  %v1742_v53 = vpop.f32.mrb[19].mxu1  ;;  %v1751_v40 = vadd.f32 %v3097_v2, %v1740_v47 }
 0x514   :  { %v3133_v59 = vmul.f32 -1.442695, %v1746_v45  ;;  %v1750_v54 = vadd.f32 %v3096_v44, %v1699_v52  ;;  %v3135_v36 = vmul.f32 -1.442695, %v1748_v33  ;;  %v1752_v38 = vadd.f32 %v3098_v50, %v1742_v53 }
 0x515   :  { %3532 = vpow2.f32 %v3131_v48  ;;  %v3132_v49 = vmul.f32 -1.442695, %v1749_v51 }
 0x516   :  { %3534 = vpow2.f32 %v3133_v59  ;;  %v3134_v62 = vmul.f32 -1.442695, %v1750_v54  ;;  %v3136_v6 = vmul.f32 -1.442695, %v1752_v38 }
 0x517   :  { %3536 = vpow2.f32 %v3132_v49 }
 0x518   :  { %3538 = vpow2.f32 %v3134_v62 }
 0x519   :  { %3540 = vtanh.f32 %v1747_v35 }
 0x51a   :  { %3542 = vpow2.f32 %v3135_v36 }
 0x51b   :  { %3544 = vtanh.f32 %v1751_v40 }
 0x51f   :  { %v3533_v58 = vpop.eup %3532 }
 0x520   :  { %v3535_v41 = vpop.eup %3534  ;;  %v1759_v37 = vadd.f32 1.0, %v3533_v58 }
 0x521   :  { %v1771_v42 = vadd.f32 1.0, %v3535_v41  ;;  %v3537_v39 = vpop.eup %3536 }
 0x522   :  { %3546 = vrcp.f32 %v1759_v37  ;;  %v1760_v43 = vadd.f32 1.0, %v3537_v39  ;;  %v3539_v44 = vpop.eup %3538 }
 0x523   :  { %3548 = vrcp.f32 %v1771_v42  ;;  %v1772_v45 = vadd.f32 1.0, %v3539_v44  ;;  %v3541_v0 = vpop.eup %3540  ;;  %v3142_v42 = vld [vmem:[%s4567_s0 + $0xa8] sm:$0xff]  ;;  %v3145_v44 = vld [vmem:[%s4567_s0 + $0x1a0] sm:$0xff] }
 0x524   :  { %3550 = vpow2.f32 %v3136_v6  ;;  %v3543_v46 = vpop.eup %3542 }
 0x525   :  { %3552 = vrcp.f32 %v1760_v43  ;;  %v3545_v47 = vpop.eup %3544  ;;  %v1785_v53 = vadd.f32 1.0, %v3543_v46 }
 0x526   :  { %3554 = vrcp.f32 %v1772_v45 }
 0x527   :  { %3556 = vrcp.f32 %v1785_v53 }
 0x52c   :  { %v3547_v48 = vpop.eup %3546 }
 0x52d   :  { %v3549_v51 = vpop.eup %3548  ;;  %v1795_v52 = vmul.f32 %v3547_v48, %v3541_v0 }
 0x52e   :  { %v3551_v59 = vpop.eup %3550  ;;  %v1793_v54 = vmul.f32 %v3549_v51, %v4307_v57 }
 0x52f   :  { %v3553_v60 = vpop.eup %3552  ;;  %v1786_v33 = vadd.f32 1.0, %v3551_v59 }
 0x530   :  { %v4379_v49 = vadd.f32 %v1795_v52, %v1793_v54  ;;  %v1796_v62 = vmul.f32 %v3553_v60, %v3545_v47  ;;  %v3555_v63 = vpop.eup %3554 }
 0x531   :  { %v1794_v50 = vmul.f32 %v3555_v63, %v4311_v61  ;;  %v3557_v35 = vpop.eup %3556  ;;  %v3141_v61 = vld [vmem:[%s4567_s0 + $0xa0] sm:$0xff] }
 0x532   :  { %3558 = vtanh.f32 %v4379_v49 }
 0x533   :  { %v4383_v2 = vadd.f32 %v1796_v62, %v1794_v50  ;;  %3560 = vrcp.f32 %v1786_v33  ;;  %v3144_v62 = vld [vmem:[%s4567_s0 + $0xb8] sm:$0xff]  ;;  %v3143_v50 = vld [vmem:[%s4567_s0 + $0xb0] sm:$0xff] }
 0x535   :  { %3562 = vtanh.f32 %v4383_v2 }
 0x53c   :  { %v3559_v36 = vpop.eup %3558 }
 0x53d   :  { %v1801_v38 = vmul.f32 %v3559_v36, %v3557_v35  ;;  %v3561_v57 = vpop.eup %3560  ;;  %v3148_v36 = vld [vmem:[%s4567_s0 + $0x1b8] sm:$0xff] }
 0x53f   :  { %v3299_v40 = vpack.c.bf16 %v1801_v38, %v1801_v38  ;;  %v3563_v58 = vpop.eup %3562 }
 0x540   :  { %v1802_v41 = vmul.f32 %v3563_v58, %v3561_v57 }
 0x541   :  { %3139 = vst [vmem:[%s4568_s2 + $0x10] sm:$0xf] %v3299_v40 }
 0x542   :  { %v1805_v37 = vpack.c.bf16 %v1802_v41, %v1801_v38  ;;  %v3300_v6 = vpack.c.bf16 %v1802_v41, %v1802_v41  ;;  %v3147_v38 = vld [vmem:[%s4567_s0 + $0x1b0] sm:$0xff] }
 0x544   :  { %3140 = vst [vmem:[%s4568_s2 + $0x30] sm:$0xf] %v3300_v6  ;;  %2052 = vmatmul.mubr.bf16.vlgmr.msra.gmra.mrb[20].mxu0 %v1805_v37  ;;  %2095 = vmatmul.mubr.bf16.vlgmr.msra.gmra.mrb[20].mxu1 %v1805_v37 }
 0x545   :  { %2380 = vmatpush1.bf16.msra.mxu0 %v4101_v4  ;;  %2423 = vmatpush1.bf16.msra.mxu1 %v4106_v5 }
 0x546   :  { %2381 = vmatprep.subr.bf16.mxu0 %v4115_v7  ;;  %2424 = vmatprep.subr.bf16.mxu1 %v4120_v8 }
 0x547   :  { %2411 = vmatprep.mubr.bf16.mxu0 %v3660_v1  ;;  %2454 = vmatprep.mubr.bf16.mxu1 %v3660_v1 }
 0x549   :  { %2382 = vmatpush1.bf16.msra.mxu0 %v4125_v9  ;;  %2425 = vmatpush1.bf16.msra.mxu1 %v4130_v10 }
 0x54a   :  { %2383 = vmatprep.subr.bf16.mxu0 %v4139_v11  ;;  %2426 = vmatprep.subr.bf16.mxu1 %v4144_v12 }
 0x54d   :  { %2384 = vmatpush1.bf16.msra.mxu0 %v4149_v13  ;;  %2427 = vmatpush1.bf16.msra.mxu1 %v4154_v14 }
 0x54e   :  { %2385 = vmatprep.subr.bf16.mxu0 %v4163_v15  ;;  %2428 = vmatprep.subr.bf16.mxu1 %v4168_v16 }
 0x551   :  { %2386 = vmatpush1.bf16.msra.mxu0 %v4173_v17  ;;  %2429 = vmatpush1.bf16.msra.mxu1 %v4178_v18 }
 0x552   :  { %2387 = vmatprep.subr.bf16.mxu0 %v4187_v19  ;;  %2430 = vmatprep.subr.bf16.mxu1 %v4192_v20 }
 0x555   :  { %2388 = vmatpush1.bf16.msra.mxu0 %v4197_v21  ;;  %2431 = vmatpush1.bf16.msra.mxu1 %v4202_v22 }
 0x556   :  { %2389 = vmatprep.subr.bf16.mxu0 %v4209_v23  ;;  %2432 = vmatprep.subr.bf16.mxu1 %v4214_v24 }
 0x559   :  { %2390 = vmatpush1.bf16.msra.mxu0 %v4221_v25  ;;  %2433 = vmatpush1.bf16.msra.mxu1 %v4226_v26 }
 0x55a   :  { %2391 = vmatprep.subr.bf16.mxu0 %v4233_v27  ;;  %2434 = vmatprep.subr.bf16.mxu1 %v4238_v28 }
 0x55d   :  { %2392 = vmatpush1.bf16.msra.mxu0 %v4245_v29  ;;  %2435 = vmatpush1.bf16.msra.mxu1 %v4250_v30 }
 0x55e   :  { %2393 = vmatprep.subr.bf16.mxu0 %v4257_v31  ;;  %2436 = vmatprep.subr.bf16.mxu1 %v4262_v32 }
 0x561   :  { %2394 = vmatpush1.bf16.msra.mxu0 %v4269_v55  ;;  %2437 = vmatpush1.bf16.msra.mxu1 %v4274_v34 }
 0x562   :  { %2739 = vmatprep.subr.bf16.mxu0 %v4091_v56  ;;  %2782 = vmatprep.subr.bf16.mxu1 %v4096_v3  ;;  %v3146_v56 = vld [vmem:[%s4567_s0 + $0x1a8] sm:$0xff] }
 0x617   :  { %v2053_v39 = vpop.f32.mrb[20].mxu0  ;;  %v2096_v43 = vpop.f32.mrb[20].mxu1 }
 0x618   :  { %v2105_v45 = vadd.f32 %v3141_v61, %v2053_v39  ;;  %v2055_v0 = vpop.f32.mrb[21].mxu0  ;;  %v2098_v46 = vpop.f32.mrb[21].mxu1  ;;  %v2107_v57 = vadd.f32 %v3143_v50, %v2096_v43 }
 0x619   :  { %v2106_v3 = vadd.f32 %v3142_v42, %v2055_v0  ;;  %v2057_v47 = vpop.f32.mrb[22].mxu0  ;;  %v2100_v48 = vpop.f32.mrb[22].mxu1  ;;  %v2108_v35 = vadd.f32 %v3144_v62, %v2098_v46 }
 0x61a   :  { %v3181_v51 = vmul.f32 -1.442695, %v2105_v45  ;;  %v2109_v52 = vadd.f32 %v3145_v44, %v2057_v47  ;;  %v2059_v53 = vpop.f32.mrb[23].mxu0  ;;  %v2102_v59 = vpop.f32.mrb[23].mxu1  ;;  %v2111_v41 = vadd.f32 %v3147_v38, %v2100_v48 }
 0x61b   :  { %v3183_v54 = vmul.f32 -1.442695, %v2106_v3  ;;  %v2110_v60 = vadd.f32 %v3146_v56, %v2059_v53  ;;  %v3185_v40 = vmul.f32 -1.442695, %v2108_v35  ;;  %v2112_v58 = vadd.f32 %v3148_v36, %v2102_v59 }
 0x61c   :  { %3564 = vpow2.f32 %v3181_v51  ;;  %v3182_v63 = vmul.f32 -1.442695, %v2109_v52 }
 0x61d   :  { %3566 = vpow2.f32 %v3183_v54  ;;  %v3184_v33 = vmul.f32 -1.442695, %v2110_v60  ;;  %v3186_v42 = vmul.f32 -1.442695, %v2112_v58 }
 0x61e   :  { %3568 = vpow2.f32 %v3182_v63 }
 0x61f   :  { %3570 = vpow2.f32 %v3184_v33 }
 0x620   :  { %3572 = vtanh.f32 %v2107_v57 }
 0x621   :  { %3574 = vpow2.f32 %v3185_v40 }
 0x622   :  { %3576 = vtanh.f32 %v2111_v41 }
 0x626   :  { %v3565_v37 = vpop.eup %3564 }
 0x627   :  { %v3567_v6 = vpop.eup %3566  ;;  %v2119_v61 = vadd.f32 1.0, %v3565_v37 }
 0x628   :  { %v2131_v39 = vadd.f32 1.0, %v3567_v6  ;;  %v3569_v44 = vpop.eup %3568 }
 0x629   :  { %3578 = vrcp.f32 %v2119_v61  ;;  %v2120_v45 = vadd.f32 1.0, %v3569_v44  ;;  %v3571_v0 = vpop.eup %3570 }
 0x62a   :  { %3580 = vrcp.f32 %v2131_v39  ;;  %v2132_v46 = vadd.f32 1.0, %v3571_v0  ;;  %v3573_v43 = vpop.eup %3572 }
 0x62b   :  { %3582 = vpow2.f32 %v3186_v42  ;;  %v3575_v56 = vpop.eup %3574 }
 0x62c   :  { %3584 = vrcp.f32 %v2120_v45  ;;  %v3577_v3 = vpop.eup %3576  ;;  %v2145_v52 = vadd.f32 1.0, %v3575_v56 }
 0x62d   :  { %3586 = vrcp.f32 %v2132_v46 }
 0x62e   :  { %3588 = vrcp.f32 %v2145_v52 }
 0x633   :  { %v3579_v47 = vpop.eup %3578 }
 0x634   :  { %v3581_v48 = vpop.eup %3580  ;;  %v2155_v51 = vmul.f32 %v3579_v47, %v3573_v43 }
 0x635   :  { %v3583_v53 = vpop.eup %3582  ;;  %v2153_v59 = vmul.f32 %v3581_v48, %v4379_v49 }
 0x636   :  { %v3585_v54 = vpop.eup %3584  ;;  %v2146_v33 = vadd.f32 1.0, %v3583_v53 }
 0x637   :  { %v4451_v60 = vadd.f32 %v2155_v51, %v2153_v59  ;;  %v2156_v62 = vmul.f32 %v3585_v54, %v3577_v3  ;;  %v3587_v63 = vpop.eup %3586 }
 0x638   :  { %v2154_v50 = vmul.f32 %v3587_v63, %v4383_v2  ;;  %v3589_v36 = vpop.eup %3588 }
 0x639   :  { %3590 = vtanh.f32 %v4451_v60 }
 0x63a   :  { %v4455_v35 = vadd.f32 %v2156_v62, %v2154_v50  ;;  %3592 = vrcp.f32 %v2146_v33 }
 0x63c   :  { %3594 = vtanh.f32 %v4455_v35 }
 0x643   :  { %v3591_v38 = vpop.eup %3590 }
 0x644   :  { %v2161_v57 = vmul.f32 %v3591_v38, %v3589_v36  ;;  %v3593_v49 = vpop.eup %3592 }
 0x646   :  { %v3301_v40 = vpack.c.bf16 %v2161_v57, %v2161_v57  ;;  %v3595_v58 = vpop.eup %3594 }
 0x647   :  { %v2162_v41 = vmul.f32 %v3595_v58, %v3593_v49 }
 0x648   :  { %3189 = vst [vmem:[%s4568_s2 + $0x14] sm:$0xf] %v3301_v40 }
 0x649   :  { %v2165_v37 = vpack.c.bf16 %v2162_v41, %v2161_v57  ;;  %v3302_v6 = vpack.c.bf16 %v2162_v41, %v2162_v41 }
 0x64b   :  { %3190 = vst [vmem:[%s4568_s2 + $0x34] sm:$0xf] %v3302_v6  ;;  %2412 = vmatmul.mubr.bf16.vlgmr.msra.gmra.mrb[24].mxu0 %v2165_v37  ;;  %2455 = vmatmul.mubr.bf16.vlgmr.msra.gmra.mrb[24].mxu1 %v2165_v37 }
 0x64c   :  { %2740 = vmatpush1.bf16.msra.mxu0 %v4101_v4  ;;  %2783 = vmatpush1.bf16.msra.mxu1 %v4106_v5  ;;  %v3192_v4 = vld [vmem:[%s4567_s0 + $0xc8] sm:$0xff] }
 0x64d   :  { %2741 = vmatprep.subr.bf16.mxu0 %v4115_v7  ;;  %2784 = vmatprep.subr.bf16.mxu1 %v4120_v8  ;;  %v3195_v8 = vld [vmem:[%s4567_s0 + $0x1c0] sm:$0xff] }
 0x64e   :  { %2771 = vmatprep.mubr.bf16.mxu0 %v3660_v1  ;;  %2814 = vmatprep.mubr.bf16.mxu1 %v3660_v1  ;;  %v3191_v1 = vld [vmem:[%s4567_s0 + $0xc0] sm:$0xff] }
 0x650   :  { %2742 = vmatpush1.bf16.msra.mxu0 %v4125_v9  ;;  %2785 = vmatpush1.bf16.msra.mxu1 %v4130_v10 }
 0x651   :  { %2743 = vmatprep.subr.bf16.mxu0 %v4139_v11  ;;  %2786 = vmatprep.subr.bf16.mxu1 %v4144_v12  ;;  %v3196_v12 = vld [vmem:[%s4567_s0 + $0x1c8] sm:$0xff] }
 0x654   :  { %2744 = vmatpush1.bf16.msra.mxu0 %v4149_v13  ;;  %2787 = vmatpush1.bf16.msra.mxu1 %v4154_v14 }
 0x655   :  { %2745 = vmatprep.subr.bf16.mxu0 %v4163_v15  ;;  %2788 = vmatprep.subr.bf16.mxu1 %v4168_v16 }
 0x658   :  { %2746 = vmatpush1.bf16.msra.mxu0 %v4173_v17  ;;  %2789 = vmatpush1.bf16.msra.mxu1 %v4178_v18 }
 0x659   :  { %2747 = vmatprep.subr.bf16.mxu0 %v4187_v19  ;;  %2790 = vmatprep.subr.bf16.mxu1 %v4192_v20 }
 0x65c   :  { %2748 = vmatpush1.bf16.msra.mxu0 %v4197_v21  ;;  %2791 = vmatpush1.bf16.msra.mxu1 %v4202_v22  ;;  %v3194_v22 = vld [vmem:[%s4567_s0 + $0xd8] sm:$0xff] }
 0x65d   :  { %2749 = vmatprep.subr.bf16.mxu0 %v4209_v23  ;;  %2792 = vmatprep.subr.bf16.mxu1 %v4214_v24 }
 0x660   :  { %2750 = vmatpush1.bf16.msra.mxu0 %v4221_v25  ;;  %2793 = vmatpush1.bf16.msra.mxu1 %v4226_v26  ;;  %v3193_v25 = vld [vmem:[%s4567_s0 + $0xd0] sm:$0xff] }
 0x661   :  { %2751 = vmatprep.subr.bf16.mxu0 %v4233_v27  ;;  %2794 = vmatprep.subr.bf16.mxu1 %v4238_v28  ;;  %v3198_v27 = vld [vmem:[%s4567_s0 + $0x1d8] sm:$0xff]  ;;  %v3197_v28 = vld [vmem:[%s4567_s0 + $0x1d0] sm:$0xff] }
 0x664   :  { %2752 = vmatpush1.bf16.msra.mxu0 %v4245_v29  ;;  %2795 = vmatpush1.bf16.msra.mxu1 %v4250_v30 }
 0x665   :  { %2753 = vmatprep.subr.bf16.mxu0 %v4257_v31  ;;  %2796 = vmatprep.subr.bf16.mxu1 %v4262_v32 }
 0x668   :  { %2754 = vmatpush1.bf16.msra.mxu0 %v4269_v55  ;;  %2797 = vmatpush1.bf16.msra.mxu1 %v4274_v34 }
 0x71e   :  { %v2413_v5 = vpop.f32.mrb[24].mxu0  ;;  %v2456_v7 = vpop.f32.mrb[24].mxu1 }
 0x71f   :  { %v2465_v9 = vadd.f32 %v3191_v1, %v2413_v5  ;;  %v2415_v10 = vpop.f32.mrb[25].mxu0  ;;  %v2458_v11 = vpop.f32.mrb[25].mxu1  ;;  %v2467_v29 = vadd.f32 %v3193_v25, %v2456_v7  ;;  %v3242_v1 = vld [vmem:[%s4567_s0 + $0xe8] sm:$0xff]  ;;  %v3245_v7 = vld [vmem:[%s4567_s0 + $0x1e0] sm:$0xff] }
 0x720   :  { %v2466_v13 = vadd.f32 %v3192_v4, %v2415_v10  ;;  %v2417_v14 = vpop.f32.mrb[26].mxu0  ;;  %v2460_v15 = vpop.f32.mrb[26].mxu1  ;;  %v2468_v26 = vadd.f32 %v3194_v22, %v2458_v11  ;;  %v3246_v11 = vld [vmem:[%s4567_s0 + $0x1e8] sm:$0xff] }
 0x721   :  { %v3231_v16 = vmul.f32 -1.442695, %v2465_v9  ;;  %v2469_v17 = vadd.f32 %v3195_v8, %v2417_v14  ;;  %v2419_v18 = vpop.f32.mrb[27].mxu0  ;;  %v2462_v19 = vpop.f32.mrb[27].mxu1  ;;  %v2471_v32 = vadd.f32 %v3197_v28, %v2460_v15 }
 0x722   :  { %v3233_v20 = vmul.f32 -1.442695, %v2466_v13  ;;  %v2470_v21 = vadd.f32 %v3196_v12, %v2419_v18  ;;  %v3235_v30 = vmul.f32 -1.442695, %v2468_v26  ;;  %v2472_v31 = vadd.f32 %v3198_v27, %v2462_v19  ;;  %v3248_v26 = vld [vmem:[%s4567_s0 + $0x1f8] sm:$0xff]  ;;  %v3247_v27 = vld [vmem:[%s4567_s0 + $0x1f0] sm:$0xff] }
 0x723   :  { %3596 = vpow2.f32 %v3231_v16  ;;  %v3232_v23 = vmul.f32 -1.442695, %v2469_v17 }
 0x724   :  { %3598 = vpow2.f32 %v3233_v20  ;;  %v3234_v24 = vmul.f32 -1.442695, %v2470_v21  ;;  %v3236_v61 = vmul.f32 -1.442695, %v2472_v31  ;;  %v3244_v21 = vld [vmem:[%s4567_s0 + $0xf8] sm:$0xff] }
 0x725   :  { %3600 = vpow2.f32 %v3232_v23 }
 0x726   :  { %3602 = vpow2.f32 %v3234_v24  ;;  %v3243_v24 = vld [vmem:[%s4567_s0 + $0xf0] sm:$0xff] }
 0x727   :  { %3604 = vtanh.f32 %v2467_v29 }
 0x728   :  { %3606 = vpow2.f32 %v3235_v30 }
 0x729   :  { %3608 = vtanh.f32 %v2471_v32 }
 0x72d   :  { %v3597_v55 = vpop.eup %3596 }
 0x72e   :  { %v3599_v34 = vpop.eup %3598  ;;  %v2479_v2 = vadd.f32 1.0, %v3597_v55 }
 0x72f   :  { %v2491_v42 = vadd.f32 1.0, %v3599_v34  ;;  %v3601_v39 = vpop.eup %3600 }
 0x730   :  { %3610 = vrcp.f32 %v2479_v2  ;;  %v2480_v44 = vadd.f32 1.0, %v3601_v39  ;;  %v3603_v45 = vpop.eup %3602 }
 0x731   :  { %3612 = vrcp.f32 %v2491_v42  ;;  %v2492_v0 = vadd.f32 1.0, %v3603_v45  ;;  %v3605_v46 = vpop.eup %3604 }
 0x732   :  { %3614 = vpow2.f32 %v3236_v61  ;;  %v3607_v43 = vpop.eup %3606 }
 0x733   :  { %3616 = vrcp.f32 %v2480_v44  ;;  %v3609_v56 = vpop.eup %3608  ;;  %v2505_v51 = vadd.f32 1.0, %v3607_v43 }
 0x734   :  { %3618 = vrcp.f32 %v2492_v0 }
 0x735   :  { %3620 = vrcp.f32 %v2505_v51 }
 0x73a   :  { %v3611_v3 = vpop.eup %3610 }
 0x73b   :  { %v3613_v47 = vpop.eup %3612  ;;  %v2515_v48 = vmul.f32 %v3611_v3, %v3605_v46 }
 0x73c   :  { %v3615_v52 = vpop.eup %3614  ;;  %v2513_v53 = vmul.f32 %v3613_v47, %v4451_v60 }
 0x73d   :  { %v3617_v59 = vpop.eup %3616  ;;  %v2506_v33 = vadd.f32 1.0, %v3615_v52 }
 0x73e   :  { %v4521_v54 = vadd.f32 %v2515_v48, %v2513_v53  ;;  %v2516_v62 = vmul.f32 %v3617_v59, %v3609_v56  ;;  %v3619_v63 = vpop.eup %3618 }
 0x73f   :  { %v2514_v50 = vmul.f32 %v3619_v63, %v4455_v35  ;;  %v3621_v38 = vpop.eup %3620  ;;  %v3241_v35 = vld [vmem:[%s4567_s0 + $0xe0] sm:$0xff] }
 0x740   :  { %3622 = vtanh.f32 %v4521_v54 }
 0x741   :  { %v4525_v36 = vadd.f32 %v2516_v62, %v2514_v50  ;;  %3624 = vrcp.f32 %v2506_v33 }
 0x743   :  { %3626 = vtanh.f32 %v4525_v36 }
 0x74a   :  { %v3623_v57 = vpop.eup %3622 }
 0x74b   :  { %v2521_v49 = vmul.f32 %v3623_v57, %v3621_v38  ;;  %v3625_v60 = vpop.eup %3624 }
 0x74d   :  { %v3303_v40 = vpack.c.bf16 %v2521_v49, %v2521_v49  ;;  %v3627_v58 = vpop.eup %3626 }
 0x74e   :  { %v2522_v41 = vmul.f32 %v3627_v58, %v3625_v60 }
 0x74f   :  { %3239 = vst [vmem:[%s4568_s2 + $0x18] sm:$0xf] %v3303_v40 }
 0x750   :  { %v2525_v37 = vpack.c.bf16 %v2522_v41, %v2521_v49  ;;  %v3304_v6 = vpack.c.bf16 %v2522_v41, %v2522_v41 }
 0x752   :  { %3240 = vst [vmem:[%s4568_s2 + $0x38] sm:$0xf] %v3304_v6  ;;  %2772 = vmatmul.mubr.bf16.vlgmr.msra.gmra.mrb[28].mxu0 %v2525_v37  ;;  %2815 = vmatmul.mubr.bf16.vlgmr.msra.gmra.mrb[28].mxu1 %v2525_v37 }
 0x825   :  { %v2773_v4 = vpop.f32.mrb[28].mxu0  ;;  %v2816_v5 = vpop.f32.mrb[28].mxu1 }
 0x826   :  { %v2825_v8 = vadd.f32 %v3241_v35, %v2773_v4  ;;  %v2775_v9 = vpop.f32.mrb[29].mxu0  ;;  %v2818_v10 = vpop.f32.mrb[29].mxu1  ;;  %v2827_v28 = vadd.f32 %v3243_v24, %v2816_v5 }
 0x827   :  { %v2826_v12 = vadd.f32 %v3242_v1, %v2775_v9  ;;  %v2777_v13 = vpop.f32.mrb[30].mxu0  ;;  %v2820_v14 = vpop.f32.mrb[30].mxu1  ;;  %v2828_v25 = vadd.f32 %v3244_v21, %v2818_v10 }
 0x828   :  { %v3281_v15 = vmul.f32 -1.442695, %v2825_v8  ;;  %v2829_v16 = vadd.f32 %v3245_v7, %v2777_v13  ;;  %v2779_v17 = vpop.f32.mrb[31].mxu0  ;;  %v2822_v18 = vpop.f32.mrb[31].mxu1  ;;  %v2831_v31 = vadd.f32 %v3247_v27, %v2820_v14 }
 0x829   :  { %v3283_v19 = vmul.f32 -1.442695, %v2826_v12  ;;  %v2830_v20 = vadd.f32 %v3246_v11, %v2779_v17  ;;  %v3285_v29 = vmul.f32 -1.442695, %v2828_v25  ;;  %v2832_v30 = vadd.f32 %v3248_v26, %v2822_v18 }
 0x82a   :  { %3628 = vpow2.f32 %v3281_v15  ;;  %v3282_v22 = vmul.f32 -1.442695, %v2829_v16 }
 0x82b   :  { %3630 = vpow2.f32 %v3283_v19  ;;  %v3284_v23 = vmul.f32 -1.442695, %v2830_v20  ;;  %v3286_v2 = vmul.f32 -1.442695, %v2832_v30 }
 0x82c   :  { %3632 = vpow2.f32 %v3282_v22 }
 0x82d   :  { %3634 = vpow2.f32 %v3284_v23 }
 0x82e   :  { %3636 = vtanh.f32 %v2827_v28 }
 0x82f   :  { %3638 = vpow2.f32 %v3285_v29 }
 0x830   :  { %3640 = vtanh.f32 %v2831_v31 }
 0x834   :  { %v3629_v32 = vpop.eup %3628 }
 0x835   :  { %v3631_v55 = vpop.eup %3630  ;;  %v2839_v34 = vadd.f32 1.0, %v3629_v32 }
 0x836   :  { %v2851_v61 = vadd.f32 1.0, %v3631_v55  ;;  %v3633_v42 = vpop.eup %3632 }
 0x837   :  { %3642 = vrcp.f32 %v2839_v34  ;;  %v2840_v39 = vadd.f32 1.0, %v3633_v42  ;;  %v3635_v44 = vpop.eup %3634 }
 0x838   :  { %3644 = vrcp.f32 %v2851_v61  ;;  %v2852_v45 = vadd.f32 1.0, %v3635_v44  ;;  %v3637_v0 = vpop.eup %3636 }
 0x839   :  { %3646 = vpow2.f32 %v3286_v2  ;;  %v3639_v46 = vpop.eup %3638 }
 0x83a   :  { %3648 = vrcp.f32 %v2840_v39  ;;  %v3641_v43 = vpop.eup %3640  ;;  %v2865_v48 = vadd.f32 1.0, %v3639_v46 }
 0x83b   :  { %3650 = vrcp.f32 %v2852_v45 }
 0x83c   :  { %3652 = vrcp.f32 %v2865_v48 }
 0x841   :  { %v3643_v56 = vpop.eup %3642 }
 0x842   :  { %v3645_v3 = vpop.eup %3644  ;;  %v2875_v47 = vmul.f32 %v3643_v56, %v3637_v0 }
 0x843   :  { %v3647_v51 = vpop.eup %3646  ;;  %v2873_v52 = vmul.f32 %v3645_v3, %v4521_v54 }
 0x844   :  { %v3649_v53 = vpop.eup %3648  ;;  %v2866_v33 = vadd.f32 1.0, %v3647_v51 }
 0x845   :  { %v2877_v59 = vadd.f32 %v2875_v47, %v2873_v52  ;;  %v2876_v62 = vmul.f32 %v3649_v53, %v3641_v43  ;;  %v3651_v63 = vpop.eup %3650 }
 0x846   :  { %v2874_v50 = vmul.f32 %v3651_v63, %v4525_v36  ;;  %v3653_v57 = vpop.eup %3652 }
 0x847   :  { %3654 = vtanh.f32 %v2877_v59 }
 0x848   :  { %v2878_v38 = vadd.f32 %v2876_v62, %v2874_v50  ;;  %3656 = vrcp.f32 %v2866_v33 }
 0x84a   :  { %3658 = vtanh.f32 %v2878_v38 }
 0x851   :  { %v3655_v49 = vpop.eup %3654 }
 0x852   :  { %v2881_v60 = vmul.f32 %v3655_v49, %v3653_v57  ;;  %v3657_v40 = vpop.eup %3656 }
 0x854   :  { %v3305_v58 = vpack.c.bf16 %v2881_v60, %v2881_v60  ;;  %v3659_v41 = vpop.eup %3658 }
 0x855   :  { %v2882_v54 = vmul.f32 %v3659_v41, %v3657_v40 }
 0x856   :  { %3289 = vst [vmem:[%s4568_s2 + $0x1c] sm:$0xf] %v3305_v58 }
 0x857   :  { %v3306_v37 = vpack.c.bf16 %v2882_v54, %v2882_v54 }
 0x859   :  { %3290 = vst [vmem:[%s4568_s2 + $0x3c] sm:$0xf] %v3306_v37 }

</bundles_post_ra>
